<compile_context>
chip_gen: v7x
topology: tpu7x:2x2x1
jax: 0.10.0
libtpu: 0.0.40
codegen_flags: <defaults>
</compile_context>

<pallas_src>
import functools

import jax
import jax.numpy as jnp
from jax import lax
from jax.experimental import pallas as pl
from jax.experimental.pallas import tpu as pltpu

NUM_CLASSES = 10
EXIT_CHANNELS = 96          # out_channels of the MobileNetV2 block before the exit (exit_layer=-6)
EXIT_CHANNELS_PAD = 128     # lane-dense padding of the 96 exit channels
HEAD_CHANNELS = 1280
NUM_CLASSES_PAD = 128       # lane-dense padding of the 10 logits
BN_EPS = 1e-5
VMEM_LIMIT = 32 * 1024 * 1024   # explicit budget, safe on v7x (64 MiB physical)


def _round_up(x, m):
    return (x + m - 1) // m * m


def _fold_bn(gamma, beta, mean, var, eps=BN_EPS):
    scale = gamma / jnp.sqrt(var + eps)
    shift = beta - mean * scale
    return scale, shift


def _bf16_elementwise_ok():
    """bf16 VALU exists on v6e/v7x; keep f32 elementwise on v5e / older chips."""
    try:
        kind = jax.devices()[0].device_kind.lower()
    except Exception:
        return False
    return ("v6" in kind) or ("v7" in kind)


# ---------------------------------------------------------------------------
# Kernel 1: fused matmul -> BN shift (scale pre-folded into W) -> ReLU6 (stem).
# ---------------------------------------------------------------------------
def _mm_bn_relu6_kernel(x_ref, w_ref, shift_ref, o_ref):
    y = jnp.dot(x_ref[...], w_ref[...], preferred_element_type=jnp.float32)
    y = y + shift_ref[...]
    o_ref[...] = jnp.clip(y, 0.0, 6.0).astype(o_ref.dtype)


def mm_bn_relu6(x, w, shift, *, tile_m=2048):
    """(rows, K)bf16 @ (K, Cout)bf16 -> +shift -> ReLU6, bf16 out (lane-dense Cout)."""
    M, K = x.shape
    _, cout = w.shape
    tile_m = min(tile_m, _round_up(M, 16))     # mem-bound: big tiles, 16-row (bf16) alignment
    grid_m = pl.cdiv(M, tile_m)                # ragged tail handled by Pallas partial blocks
    cost = pl.CostEstimate(
        flops=2 * M * K * cout,
        transcendentals=0,
        bytes_accessed=M * K * 2 + K * cout * 2 + cout * 4 + M * cout * 2)
    return pl.pallas_call(
        _mm_bn_relu6_kernel,
        out_shape=jax.ShapeDtypeStruct((M, cout), jnp.bfloat16),
        grid_spec=pltpu.PrefetchScalarGridSpec(
            num_scalar_prefetch=0,
            grid=(grid_m,),
            in_specs=[
                pl.BlockSpec((tile_m, K), lambda i: (i, 0)),
                pl.BlockSpec((K, cout), lambda i: (0, 0)),
                pl.BlockSpec((1, cout), lambda i: (0, 0)),
            ],
            out_specs=pl.BlockSpec((tile_m, cout), lambda i: (i, 0)),
        ),
        compiler_params=pltpu.CompilerParams(
            dimension_semantics=("parallel",),
            vmem_limit_bytes=VMEM_LIMIT),
        cost_estimate=cost,
    )(x, w, shift)


# ---------------------------------------------------------------------------
# Kernel 2: streaming early-exit head body:
#   1x1 conv (scale-folded) -> +shift -> ReLU6 -> global-avg-pool accumulator.
# Emits pooled (N, 1280) features; Dropout(p=0.2) is identity at inference.
# ---------------------------------------------------------------------------
def _early_exit_head_kernel(x_ref, w1_ref, shift_ref, o_ref, acc_ref, *,
                            inv_hw, hw, tile_hw, needs_mask, use_bf16):
    t = pl.program_id(1)

    @pl.when(t == 0)
    def _():
        acc_ref[...] = jnp.zeros_like(acc_ref)

    # Conv2d 1x1 on the MXU (BN scale already folded into the weight columns).
    h = jnp.dot(x_ref[...], w1_ref[...], preferred_element_type=jnp.float32)
    h = h + shift_ref[...]
    if use_bf16:
        # v6e/v7x: bf16 VALU -> clip works on packed (16,128) vregs (half the ops).
        h = h.astype(jnp.bfloat16)
    h = jnp.clip(h, 0.0, 6.0)                                  # ReLU6
    if needs_mask:
        # Zero ragged-tail rows AFTER the shift/clip so they contribute exactly 0.
        row = lax.broadcasted_iota(jnp.int32, (tile_hw, 1), 0) + t * tile_hw
        h = jnp.where(row < hw, h, jnp.zeros_like(h))
    # AdaptiveAvgPool2d((1,1)): accumulate row sums (f32 accumulation into scratch).
    acc_ref[...] += jnp.sum(h, axis=0, keepdims=True, dtype=jnp.float32)

    @pl.when(t == pl.num_programs(1) - 1)
    def _():
        o_ref[...] = (acc_ref[...] * inv_hw)[None].astype(o_ref.dtype)   # mean + Flatten


def early_exit_head(feat_nhwc, plan, *, use_bf16_elementwise):
    n, h, w, c = feat_nhwc.shape
    hw = h * w
    x3 = feat_nhwc.reshape(n, hw, c)           # sample-major rows, channels-last

    # ~512 rows/step keeps MXU rows full; cdiv grid + masked tail handles any hw.
    tile_hw = 512 if hw >= 512 else hw
    grid_t = pl.cdiv(hw, tile_hw)
    needs_mask = (hw % tile_hw) != 0

    # TODO(synk): for N=1 on v7x, split the hw reduction across the two
    # TensorCores (per-core partial pool sums combined afterwards); with the
    # current grid only the batch axis is 'parallel'.
    kernel = functools.partial(
        _early_exit_head_kernel,
        inv_hw=1.0 / float(hw), hw=hw, tile_hw=tile_hw,
        needs_mask=needs_mask, use_bf16=use_bf16_elementwise)

    cost = pl.CostEstimate(
        flops=2 * n * hw * c * HEAD_CHANNELS,
        transcendentals=0,
        bytes_accessed=(n * hw * c * 2 + c * HEAD_CHANNELS * 2
                        + HEAD_CHANNELS * 4 + n * HEAD_CHANNELS * 4))

    pooled = pl.pallas_call(
        kernel,
        out_shape=jax.ShapeDtypeStruct((n, 1, HEAD_CHANNELS), jnp.float32),
        grid_spec=pltpu.PrefetchScalarGridSpec(
            num_scalar_prefetch=0,
            grid=(n, grid_t),
            in_specs=[
                pl.BlockSpec((pl.Squeezed(), tile_hw, c), lambda i, t: (i, t, 0)),
                pl.BlockSpec((c, HEAD_CHANNELS), lambda i, t: (0, 0)),
                pl.BlockSpec((1, HEAD_CHANNELS), lambda i, t: (0, 0)),
            ],
            out_specs=pl.BlockSpec((1, 1, HEAD_CHANNELS), lambda i, t: (i, 0, 0)),
            scratch_shapes=[pltpu.VMEM((1, HEAD_CHANNELS), jnp.float32)],
        ),
        compiler_params=pltpu.CompilerParams(
            dimension_semantics=("parallel", "arbitrary"),
            vmem_limit_bytes=VMEM_LIMIT),
        cost_estimate=cost,
    )(x3, plan["conv_w"], plan["bn_shift"])
    return pooled.reshape(n, HEAD_CHANNELS)


# ---------------------------------------------------------------------------
# Kernel 3: batched final Linear(1280, 10) over the pooled features.
# ---------------------------------------------------------------------------
def _linear_kernel(x_ref, w_ref, b_ref, o_ref):
    x = x_ref[...].astype(jnp.bfloat16)
    o_ref[...] = jnp.dot(x, w_ref[...], preferred_element_type=jnp.float32) + b_ref[...]


def linear_head(pooled, plan):
    n, k = pooled.shape
    cost = pl.CostEstimate(
        flops=2 * n * k * NUM_CLASSES_PAD,
        transcendentals=0,
        bytes_accessed=(n * k * 4 + k * NUM_CLASSES_PAD * 2
                        + NUM_CLASSES_PAD * 4 + n * NUM_CLASSES_PAD * 4))
    out = pl.pallas_call(
        _linear_kernel,
        out_shape=jax.ShapeDtypeStruct((n, NUM_CLASSES_PAD), jnp.float32),
        grid=(1,),
        in_specs=[
            pl.BlockSpec((n, k), lambda i: (0, 0)),
            pl.BlockSpec((k, NUM_CLASSES_PAD), lambda i: (0, 0)),
            pl.BlockSpec((1, NUM_CLASSES_PAD), lambda i: (0, 0)),
        ],
        out_specs=pl.BlockSpec((n, NUM_CLASSES_PAD), lambda i: (0, 0)),
        compiler_params=pltpu.CompilerParams(vmem_limit_bytes=VMEM_LIMIT),
        cost_estimate=cost,
    )(pooled, plan["fc_w"], plan["fc_b"])
    return out[:, :NUM_CLASSES]


# ---------------------------------------------------------------------------
# Frozen backbone (`self.features`)
# ---------------------------------------------------------------------------
def backbone_standin(x_nchw, plan):
    # TODO(synk): the real `self.features` is a frozen, truncated pretrained
    # MobileNetV2 passed in as `original_model`; its weights/architecture are not
    # derivable from this module's code, so a single deterministic frozen
    # Conv3x3(s=2)->BN->ReLU6 stage producing the exit feature maps stands in
    # for it (the conv matmul itself runs in the Pallas kernel via im2col).
    # TODO(synk): the im2col (conv_general_dilated_patches) still runs in XLA and
    # round-trips a 9x-sized patches tensor through HBM; fusing the 3x3 s=2 patch
    # extraction into the stem kernel (halo DMA + shifted loads) is the largest
    # remaining win on this mem-bound path.
    n = x_nchw.shape[0]
    patches = lax.conv_general_dilated_patches(
        x_nchw, filter_shape=(3, 3), window_strides=(2, 2),
        padding=((1, 1), (1, 1)))                          # (N, Cin*9, Ho, Wo)
    _, k, ho, wo = patches.shape
    rows = patches.transpose(0, 2, 3, 1).reshape(n * ho * wo, k).astype(jnp.bfloat16)
    out = mm_bn_relu6(rows, plan["stem_w"], plan["stem_bn_shift"])
    return out.reshape(n, ho, wo, EXIT_CHANNELS_PAD)       # NHWC, bf16, lane-dense 128


# ---------------------------------------------------------------------------
# Parameters (deterministic, PyTorch-layout shapes from the module __init__)
# ---------------------------------------------------------------------------
def init_params(key):
    ks = jax.random.split(key, 12)
    p = {}
    # frozen backbone stand-in: Conv3x3(3->96, s=2, p=1, bias=False) + BN
    p["stem_w"] = 0.1 * jax.random.normal(ks[0], (3 * 3 * 3, EXIT_CHANNELS), jnp.float32)
    p["stem_bn_gamma"] = 1.0 + 0.01 * jax.random.normal(ks[1], (EXIT_CHANNELS,), jnp.float32)
    p["stem_bn_beta"] = 0.01 * jax.random.normal(ks[2], (EXIT_CHANNELS,), jnp.float32)
    p["stem_bn_mean"] = 0.01 * jax.random.normal(ks[3], (EXIT_CHANNELS,), jnp.float32)
    p["stem_bn_var"] = jnp.abs(1.0 + 0.01 * jax.random.normal(ks[4], (EXIT_CHANNELS,), jnp.float32))
    # early_exit head (the module's own layers):
    # nn.Conv2d(exit_channel, 1280, 1, bias=False): weight (1280, exit_channel, 1, 1)
    p["conv_w"] = 0.05 * jax.random.normal(ks[5], (HEAD_CHANNELS, EXIT_CHANNELS, 1, 1), jnp.float32)
    # nn.BatchNorm2d(1280, eps=1e-5)
    p["bn_gamma"] = 1.0 + 0.01 * jax.random.normal(ks[6], (HEAD_CHANNELS,), jnp.float32)
    p["bn_beta"] = 0.01 * jax.random.normal(ks[7], (HEAD_CHANNELS,), jnp.float32)
    p["bn_mean"] = 0.01 * jax.random.normal(ks[8], (HEAD_CHANNELS,), jnp.float32)
    p["bn_var"] = jnp.abs(1.0 + 0.01 * jax.random.normal(ks[9], (HEAD_CHANNELS,), jnp.float32))
    # nn.Linear(1280, 10): weight (10, 1280), bias (10)
    p["fc_w"] = 0.05 * jax.random.normal(ks[10], (NUM_CLASSES, HEAD_CHANNELS), jnp.float32)
    p["fc_b"] = 0.01 * jax.random.normal(ks[11], (NUM_CLASSES,), jnp.float32)
    return p


def prepare_params(p):
    """One-time prep: fold BN (scale into conv weight columns, shift kept separate),
    pad channel dims to lane-dense 128, cast matmul operands to bf16."""
    plan = {}
    cpad = EXIT_CHANNELS_PAD - EXIT_CHANNELS

    # Stem: fold BN scale into weight columns; pad out-channels 96 -> 128 with
    # zero weight columns and zero shift (padded channels are exact zeros).
    s, b = _fold_bn(p["stem_bn_gamma"], p["stem_bn_beta"],
                    p["stem_bn_mean"], p["stem_bn_var"])
    stem_w = p["stem_w"] * s[None, :]
    plan["stem_w"] = jnp.pad(stem_w, ((0, 0), (0, cpad))).astype(jnp.bfloat16)
    plan["stem_bn_shift"] = jnp.pad(b, (0, cpad)).reshape(1, -1)

    # Head 1x1 conv: (1280, 96, 1, 1) -> (96, 1280); fold BN scale into columns,
    # pad contraction rows 96 -> 128 with zeros (padded input channels are zero).
    s, b = _fold_bn(p["bn_gamma"], p["bn_beta"], p["bn_mean"], p["bn_var"])
    conv_w = p["conv_w"][:, :, 0, 0].T * s[None, :]
    plan["conv_w"] = jnp.pad(conv_w, ((0, cpad), (0, 0))).astype(jnp.bfloat16)
    plan["bn_shift"] = b.reshape(1, -1)

    # Final Linear: (10, 1280) -> (1280, 10) -> pad logits to 128 lanes, bf16 weight.
    fc_w = jnp.pad(p["fc_w"].T, ((0, 0), (0, NUM_CLASSES_PAD - NUM_CLASSES)))
    plan["fc_w"] = fc_w.astype(jnp.bfloat16)
    plan["fc_b"] = jnp.pad(p["fc_b"], (0, NUM_CLASSES_PAD - NUM_CLASSES)).reshape(1, -1)
    return plan


@functools.partial(jax.jit, static_argnames=("use_bf16_elementwise",))
def early_exit_mobilenet_forward(x_nchw, plan, *, use_bf16_elementwise=False):
    feats = backbone_standin(x_nchw, plan)                         # frozen features (NHWC, bf16)
    pooled = early_exit_head(feats, plan,
                             use_bf16_elementwise=use_bf16_elementwise)  # (N, 1280) f32
    return linear_head(pooled, plan)                               # (N, NUM_CLASSES) f32


if __name__ == "__main__":
    key = jax.random.PRNGKey(0)
    kx, kp = jax.random.split(key)
    x = jax.random.normal(kx, (2, 3, 16, 16), jnp.float32)   # NCHW, like the PyTorch module
    params = init_params(kp)
    plan = prepare_params(params)
    out = early_exit_mobilenet_forward(
        x, plan, use_bf16_elementwise=_bf16_elementwise_ok())
    jax.block_until_ready(out)
    assert out.shape == (2, NUM_CLASSES) and out.dtype == jnp.float32
    print("KERNEL_OK")
</pallas_src>

<mosaic_0001>
module attributes {stable_mosaic.version = 11 : i64} {
  func.func @_early_exit_head_kernel(%arg0: i32, %arg1: i32, %arg2: memref<1x64x128xbf16, #tpu.memory_space<vmem>>, %arg3: memref<128x1280xbf16, #tpu.memory_space<vmem>>, %arg4: memref<1x1280xf32, #tpu.memory_space<vmem>>, %arg5: memref<1x1x1280xf32, #tpu.memory_space<vmem>>, %arg6: memref<1x1280xf32, #tpu.memory_space<vmem>>) attributes {dimension_semantics = [#tpu.dimension_semantics<parallel>, #tpu.dimension_semantics<arbitrary>], iteration_bounds = array<i64: 2, 1>, scalar_prefetch = 0 : i64, scratch_operands = 1 : i64, tpu.core_type = #tpu.core_type<tc>, window_params = [{transform_indices = @transform_0, window_bounds = array<i64: 1, 64, 128>}, {pipeline_mode = #tpu.pipeline_mode<synchronous>, transform_indices = @transform_1, window_bounds = array<i64: 128, 1280>}, {pipeline_mode = #tpu.pipeline_mode<synchronous>, transform_indices = @transform_2, window_bounds = array<i64: 1, 1280>}, {transform_indices = @transform_3, window_bounds = array<i64: 1, 1, 1280>}]} {
    %c0_i32 = arith.constant 0 : i32
    %0 = arith.cmpi eq, %arg1, %c0_i32 : i32
    %1 = arith.extui %0 : i1 to i32
    %c0_i32_0 = arith.constant 0 : i32
    %2 = arith.cmpi ne, %1, %c0_i32_0 : i32
    scf.if %2 {
      %cst_16 = arith.constant 0.000000e+00 : f32
      %22 = vector.broadcast %cst_16 : f32 to vector<1x1280xf32>
      %c0_17 = arith.constant 0 : index
      %c0_18 = arith.constant 0 : index
      %23 = vector.load %arg6[%c0_17, %c0_18] : memref<1x1280xf32, #tpu.memory_space<vmem>>, vector<1x1280xf32>
      tpu.vector_store %arg6[%c0_17, %c0_18], %22 {strides = array<i32>} : memref<1x1280xf32, #tpu.memory_space<vmem>>, vector<1x1280xf32>,
    } else {
    }
    %c0 = arith.constant 0 : index
    %c0_1 = arith.constant 0 : index
    %c0_2 = arith.constant 0 : index
    %3 = vector.load %arg2[%c0, %c0_1, %c0_2] : memref<1x64x128xbf16, #tpu.memory_space<vmem>>, vector<1x64x128xbf16>
    %4 = vector.shape_cast %3 : vector<1x64x128xbf16> to vector<64x128xbf16>
    %c0_3 = arith.constant 0 : index
    %c0_4 = arith.constant 0 : index
    %5 = vector.load %arg3[%c0_3, %c0_4] : memref<128x1280xbf16, #tpu.memory_space<vmem>>, vector<128x1280xbf16>
    %cst = arith.constant dense<0.000000e+00> : vector<64x1280xf32>
    %6 = tpu.matmul %4, %5, %cst {dimension_numbers = #tpu.dot_dimension_numbers<[1], [0], [0], [1], [0, 0, 1, 1], [], []>} : vector<64x128xbf16>, vector<128x1280xbf16>, vector<64x1280xf32> -> vector<64x1280xf32>
    %c0_5 = arith.constant 0 : index
    %c0_6 = arith.constant 0 : index
    %7 = vector.load %arg4[%c0_5, %c0_6] : memref<1x1280xf32, #tpu.memory_space<vmem>>, vector<1x1280xf32>
    %8 = vector.broadcast %7 : vector<1x1280xf32> to vector<64x1280xf32>
    %9 = arith.addf %6, %8 : vector<64x1280xf32>
    %cst_7 = arith.constant 0.000000e+00 : f32
    %cst_8 = arith.constant 6.000000e+00 : f32
    %10 = vector.broadcast %cst_7 : f32 to vector<64x1280xf32>
    %11 = arith.maximumf %10, %9 : vector<64x1280xf32>
    %12 = vector.broadcast %cst_8 : f32 to vector<64x1280xf32>
    %13 = arith.minimumf %12, %11 : vector<64x1280xf32>
    %c0_9 = arith.constant 0 : index
    %c0_10 = arith.constant 0 : index
    %14 = vector.load %arg6[%c0_9, %c0_10] : memref<1x1280xf32, #tpu.memory_space<vmem>>, vector<1x1280xf32>
    %cst_11 = arith.constant dense<0.000000e+00> : vector<1280xf32>
    %15 = vector.multi_reduction <add>, %13, %cst_11 [0] : vector<64x1280xf32> to vector<1280xf32>
    %16 = vector.shape_cast %15 : vector<1280xf32> to vector<1x1280xf32>
    %17 = arith.addf %14, %16 : vector<1x1280xf32>
    %c0_12 = arith.constant 0 : index
    %c0_13 = arith.constant 0 : index
    %18 = vector.load %arg6[%c0_12, %c0_13] : memref<1x1280xf32, #tpu.memory_space<vmem>>, vector<1x1280xf32>
    tpu.vector_store %arg6[%c0_12, %c0_13], %17 {strides = array<i32>} : memref<1x1280xf32, #tpu.memory_space<vmem>>, vector<1x1280xf32>,
    %c0_i32_14 = arith.constant 0 : i32
    %19 = arith.cmpi eq, %arg1, %c0_i32_14 : i32
    %20 = arith.extui %19 : i1 to i32
    %c0_i32_15 = arith.constant 0 : i32
    %21 = arith.cmpi ne, %20, %c0_i32_15 : i32
    scf.if %21 {
      %c0_16 = arith.constant 0 : index
      %c0_17 = arith.constant 0 : index
      %22 = vector.load %arg6[%c0_16, %c0_17] : memref<1x1280xf32, #tpu.memory_space<vmem>>, vector<1x1280xf32>
      %cst_18 = arith.constant 1.562500e-02 : f32
      %23 = vector.broadcast %cst_18 : f32 to vector<1x1280xf32>
      %24 = arith.mulf %22, %23 : vector<1x1280xf32>
      %25 = vector.shape_cast %24 : vector<1x1280xf32> to vector<1x1x1280xf32>
      %c0_19 = arith.constant 0 : index
      %c0_20 = arith.constant 0 : index
      %c0_21 = arith.constant 0 : index
      %26 = vector.load %arg5[%c0_19, %c0_20, %c0_21] : memref<1x1x1280xf32, #tpu.memory_space<vmem>>, vector<1x1x1280xf32>
      tpu.vector_store %arg5[%c0_19, %c0_20, %c0_21], %25 {strides = array<i32>} : memref<1x1x1280xf32, #tpu.memory_space<vmem>>, vector<1x1x1280xf32>,
    } else {
    }
    return
  }
  func.func @transform_0(%arg0: i32, %arg1: i32) -> (i32, i32, i32) {
    %c0_i32 = arith.constant 0 : i32
    %c0_i32_0 = arith.constant 0 : i32
    return %arg0, %arg1, %c0_i32 : i32, i32, i32
  }
  func.func @transform_1(%arg0: i32, %arg1: i32) -> (i32, i32) {
    %c0_i32 = arith.constant 0 : i32
    %c0_i32_0 = arith.constant 0 : i32
    %c0_i32_1 = arith.constant 0 : i32
    return %c0_i32, %c0_i32_0 : i32, i32
  }
  func.func @transform_2(%arg0: i32, %arg1: i32) -> (i32, i32) {
    %c0_i32 = arith.constant 0 : i32
    %c0_i32_0 = arith.constant 0 : i32
    %c0_i32_1 = arith.constant 0 : i32
    return %c0_i32, %c0_i32_0 : i32, i32
  }
  func.func @transform_3(%arg0: i32, %arg1: i32) -> (i32, i32, i32) {
    %c0_i32 = arith.constant 0 : i32
    %c0_i32_0 = arith.constant 0 : i32
    %c0_i32_1 = arith.constant 0 : i32
    return %arg0, %c0_i32, %c0_i32_0 : i32, i32, i32
  }
}

module attributes {stable_mosaic.version = 11 : i64} {
  func.func @_mm_bn_relu6_kernel(%arg0: i32, %arg1: memref<128x27xbf16, #tpu.memory_space<vmem>>, %arg2: memref<27x128xbf16, #tpu.memory_space<vmem>>, %arg3: memref<1x128xf32, #tpu.memory_space<vmem>>, %arg4: memref<128x128xbf16, #tpu.memory_space<vmem>>) attributes {dimension_semantics = [#tpu.dimension_semantics<parallel>], iteration_bounds = array<i64: 1>, scalar_prefetch = 0 : i64, scratch_operands = 0 : i64, tpu.core_type = #tpu.core_type<tc>, window_params = [{transform_indices = @transform_0, window_bounds = array<i64: 128, 27>}, {pipeline_mode = #tpu.pipeline_mode<synchronous>, transform_indices = @transform_1, window_bounds = array<i64: 27, 128>}, {pipeline_mode = #tpu.pipeline_mode<synchronous>, transform_indices = @transform_2, window_bounds = array<i64: 1, 128>}, {transform_indices = @transform_3, window_bounds = array<i64: 128, 128>}]} {
    %c0 = arith.constant 0 : index
    %c0_0 = arith.constant 0 : index
    %0 = vector.load %arg1[%c0, %c0_0] : memref<128x27xbf16, #tpu.memory_space<vmem>>, vector<128x27xbf16>
    %c0_1 = arith.constant 0 : index
    %c0_2 = arith.constant 0 : index
    %1 = vector.load %arg2[%c0_1, %c0_2] : memref<27x128xbf16, #tpu.memory_space<vmem>>, vector<27x128xbf16>
    %cst = arith.constant dense<0.000000e+00> : vector<128x128xf32>
    %2 = tpu.matmul %0, %1, %cst {dimension_numbers = #tpu.dot_dimension_numbers<[1], [0], [0], [1], [0, 0, 1, 1], [], []>} : vector<128x27xbf16>, vector<27x128xbf16>, vector<128x128xf32> -> vector<128x128xf32>
    %c0_3 = arith.constant 0 : index
    %c0_4 = arith.constant 0 : index
    %3 = vector.load %arg3[%c0_3, %c0_4] : memref<1x128xf32, #tpu.memory_space<vmem>>, vector<1x128xf32>
    %4 = vector.broadcast %3 : vector<1x128xf32> to vector<128x128xf32>
    %5 = arith.addf %2, %4 : vector<128x128xf32>
    %cst_5 = arith.constant 0.000000e+00 : f32
    %cst_6 = arith.constant 6.000000e+00 : f32
    %6 = vector.broadcast %cst_5 : f32 to vector<128x128xf32>
    %7 = arith.maximumf %6, %5 : vector<128x128xf32>
    %8 = vector.broadcast %cst_6 : f32 to vector<128x128xf32>
    %9 = arith.minimumf %8, %7 : vector<128x128xf32>
    %10 = arith.truncf %9 : vector<128x128xf32> to vector<128x128xbf16>
    %c0_7 = arith.constant 0 : index
    %c0_8 = arith.constant 0 : index
    %11 = vector.load %arg4[%c0_7, %c0_8] : memref<128x128xbf16, #tpu.memory_space<vmem>>, vector<128x128xbf16>
    tpu.vector_store %arg4[%c0_7, %c0_8], %10 {strides = array<i32>} : memref<128x128xbf16, #tpu.memory_space<vmem>>, vector<128x128xbf16>,
    return
  }
  func.func @transform_0(%arg0: i32) -> (i32, i32) {
    %c0_i32 = arith.constant 0 : i32
    %c0_i32_0 = arith.constant 0 : i32
    return %arg0, %c0_i32 : i32, i32
  }
  func.func @transform_1(%arg0: i32) -> (i32, i32) {
    %c0_i32 = arith.constant 0 : i32
    %c0_i32_0 = arith.constant 0 : i32
    %c0_i32_1 = arith.constant 0 : i32
    return %c0_i32, %c0_i32_0 : i32, i32
  }
  func.func @transform_2(%arg0: i32) -> (i32, i32) {
    %c0_i32 = arith.constant 0 : i32
    %c0_i32_0 = arith.constant 0 : i32
    %c0_i32_1 = arith.constant 0 : i32
    return %c0_i32, %c0_i32_0 : i32, i32
  }
  func.func @transform_3(%arg0: i32) -> (i32, i32) {
    %c0_i32 = arith.constant 0 : i32
    %c0_i32_0 = arith.constant 0 : i32
    return %arg0, %c0_i32 : i32, i32
  }
}

module attributes {stable_mosaic.version = 11 : i64} {
  func.func @_linear_kernel(%arg0: i32, %arg1: memref<2x1280xf32, #tpu.memory_space<vmem>>, %arg2: memref<1280x128xbf16, #tpu.memory_space<vmem>>, %arg3: memref<1x128xf32, #tpu.memory_space<vmem>>, %arg4: memref<2x128xf32, #tpu.memory_space<vmem>>) attributes {dimension_semantics = [#tpu.dimension_semantics<arbitrary>], iteration_bounds = array<i64: 1>, scalar_prefetch = 0 : i64, scratch_operands = 0 : i64, tpu.core_type = #tpu.core_type<tc>, window_params = [{pipeline_mode = #tpu.pipeline_mode<synchronous>, transform_indices = @transform_0, window_bounds = array<i64: 2, 1280>}, {pipeline_mode = #tpu.pipeline_mode<synchronous>, transform_indices = @transform_1, window_bounds = array<i64: 1280, 128>}, {pipeline_mode = #tpu.pipeline_mode<synchronous>, transform_indices = @transform_2, window_bounds = array<i64: 1, 128>}, {pipeline_mode = #tpu.pipeline_mode<synchronous>, transform_indices = @transform_3, window_bounds = array<i64: 2, 128>}]} {
    %c0 = arith.constant 0 : index
    %c0_0 = arith.constant 0 : index
    %0 = vector.load %arg1[%c0, %c0_0] : memref<2x1280xf32, #tpu.memory_space<vmem>>, vector<2x1280xf32>
    %1 = arith.truncf %0 : vector<2x1280xf32> to vector<2x1280xbf16>
    %c0_1 = arith.constant 0 : index
    %c0_2 = arith.constant 0 : index
    %2 = vector.load %arg2[%c0_1, %c0_2] : memref<1280x128xbf16, #tpu.memory_space<vmem>>, vector<1280x128xbf16>
    %cst = arith.constant dense<0.000000e+00> : vector<2x128xf32>
    %3 = tpu.matmul %1, %2, %cst {dimension_numbers = #tpu.dot_dimension_numbers<[1], [0], [0], [1], [0, 0, 1, 1], [], []>} : vector<2x1280xbf16>, vector<1280x128xbf16>, vector<2x128xf32> -> vector<2x128xf32>
    %c0_3 = arith.constant 0 : index
    %c0_4 = arith.constant 0 : index
    %4 = vector.load %arg3[%c0_3, %c0_4] : memref<1x128xf32, #tpu.memory_space<vmem>>, vector<1x128xf32>
    %5 = vector.broadcast %4 : vector<1x128xf32> to vector<2x128xf32>
    %6 = arith.addf %3, %5 : vector<2x128xf32>
    %c0_5 = arith.constant 0 : index
    %c0_6 = arith.constant 0 : index
    %7 = vector.load %arg4[%c0_5, %c0_6] : memref<2x128xf32, #tpu.memory_space<vmem>>, vector<2x128xf32>
    tpu.vector_store %arg4[%c0_5, %c0_6], %6 {strides = array<i32>} : memref<2x128xf32, #tpu.memory_space<vmem>>, vector<2x128xf32>,
    return
  }
  func.func @transform_0(%arg0: i32) -> (i32, i32) {
    %c0_i32 = arith.constant 0 : i32
    %c0_i32_0 = arith.constant 0 : i32
    %c0_i32_1 = arith.constant 0 : i32
    return %c0_i32, %c0_i32_0 : i32, i32
  }
  func.func @transform_1(%arg0: i32) -> (i32, i32) {
    %c0_i32 = arith.constant 0 : i32
    %c0_i32_0 = arith.constant 0 : i32
    %c0_i32_1 = arith.constant 0 : i32
    return %c0_i32, %c0_i32_0 : i32, i32
  }
  func.func @transform_2(%arg0: i32) -> (i32, i32) {
    %c0_i32 = arith.constant 0 : i32
    %c0_i32_0 = arith.constant 0 : i32
    %c0_i32_1 = arith.constant 0 : i32
    return %c0_i32, %c0_i32_0 : i32, i32
  }
  func.func @transform_3(%arg0: i32) -> (i32, i32) {
    %c0_i32 = arith.constant 0 : i32
    %c0_i32_0 = arith.constant 0 : i32
    %c0_i32_1 = arith.constant 0 : i32
    return %c0_i32, %c0_i32_0 : i32, i32
  }
}

</mosaic_0001>

<bundles_post_ra>
// kernel: early_exit_mobilenet_forward.3
= control target key start
LH: loop header
LB: loop body
LE: loop exit
PB: predicated region body
PF: predicated region fallthrough
CT: control target
= control target key end

     0   :  { %vm118_vm0 = vcmask 1044480   ;;  %vm119_vm1 = vcmask 1045504   ;;  %vm93_vm2 = vcmask 220160   ;;  %v481_v1 = vmov 65535   ;;  %s567_s1 = inlined_call_operand.vmem [shape: bf16[27,128], index: 1, kind: input, shape index: {}]   ;;  %s568_s0 = inlined_call_operand.vmem [shape: bf16[128,27], index: 0, kind: input, shape index: {}]   ;;  %s569_s2 = inlined_call_operand.vmem [shape: f32[1,128], index: 2, kind: input, shape index: {}]   ;;  %s570_s3 = inlined_call_operand.vmem [shape: bf16[128,128], index: 3, kind: output, shape index: {}]  }
   0x1   :  { %v471_v0 = vld [vmem:[%s567_s1] sm:$0xff]   ;;  %v120_v2 = vsel %vm118_vm0, 4294967295, %v481_v1  ;;  %v472_v3 = vld [vmem:[%s567_s1 + $0x8] sm:$0x3f]   ;;  %v477_v10 = vld [vmem:[%s568_s0 + $0x10] sm:$0xff]  }
   0x2   :  { %446 = vmatprep.subr.bf16.mxu0 %v471_v0  ;;  %466 = vmatprep.subr.bf16.mxu1 %v471_v0  ;;  %v121_v4 = vsel %vm119_vm1, %v120_v2, 0  ;;  %v473_v5 = vld [vmem:[%s568_s0] sm:$0xff]   ;;  %v475_v8 = vld [vmem:[%s568_s0 + $0x8] sm:$0xff]   ;;  %v478_v11 = vld [vmem:[%s568_s0 + $0x30] sm:$0xff]  }
   0x3   :  { %447 = vmatpush3.bf16.msra.mxu0 %v471_v0  ;;  %468 = vmatpush3.bf16.msra.mxu1 %v471_v0  ;;  %v123_v6 = vand.u32 %v472_v3, %v121_v4  ;;  %v474_v7 = vld [vmem:[%s568_s0 + $0x20] sm:$0xff]   ;;  %v476_v9 = vld [vmem:[%s568_s0 + $0x28] sm:$0xff]   ;;  %v479_v12 = vld [vmem:[%s568_s0 + $0x18] sm:$0xff]  }
   0x4   :  { %450 = vmatprep.mubr.msk.bf16.mxu0 %vm93_vm2, %v473_v5  ;;  %458 = vmatprep.mubr.msk.bf16.mxu1 %vm93_vm2, %v474_v7  ;;  %v480_v13 = vld [vmem:[%s568_s0 + $0x38] sm:$0xff]   ;;  %v338_v14 = vld [vmem:[%s569_s2] ss:$0 sm:$0xff] }
   0x5   :  { %448 = vmatprep.subr.bf16.mxu0 %v123_v6  ;;  %467 = vmatprep.subr.bf16.mxu1 %v123_v6 }
   0x7   :  { %449 = vmatpush3.bf16.msra.mxu0 %v123_v6  ;;  %469 = vmatpush3.bf16.msra.mxu1 %v123_v6 }
   0xa   :  { %451 = vmatmul.mubr.msk.bf16.vlgmr.msra.gmra.mrb[0].mxu0 %vm93_vm2, %v475_v8  ;;  %459 = vmatmul.mubr.msk.bf16.vlgmr.msra.gmra.mrb[0].mxu1 %vm93_vm2, %v476_v9 }
   0xb   :  { %454 = vmatprep.mubr.msk.bf16.mxu0 %vm93_vm2, %v477_v10  ;;  %462 = vmatprep.mubr.msk.bf16.mxu1 %vm93_vm2, %v478_v11 }
  0x12   :  { %455 = vmatmul.mubr.msk.bf16.gmra.mrb[4].mxu0 %vm93_vm2, %v479_v12  ;;  %463 = vmatmul.mubr.msk.bf16.gmra.mrb[4].mxu1 %vm93_vm2, %v480_v13 }
  0xdd   :  { %v452_v15 = vpop.f32.mrb[0].mxu0  ;;  %v460_v16 = vpop.f32.mrb[0].mxu1 }
  0xde   :  { %v168_v17 = vadd.f32 %v452_v15, %v338_v14  ;;  %v200_v18 = vadd.f32 %v460_v16, %v338_v14  ;;  %v159_v19 = vpop.f32.mrb[1].mxu0  ;;  %v191_v20 = vpop.f32.mrb[1].mxu1 }
  0xdf   :  { %v160_v21 = vadd.f32 %v338_v14, %v159_v19  ;;  %v192_v22 = vadd.f32 %v338_v14, %v191_v20  ;;  %v453_v23 = vpop.f32.mrb[2].mxu0  ;;  %v461_v24 = vpop.f32.mrb[2].mxu1 }
  0xe0   :  { %v224_v25 = vmax.f32 %v168_v17, 0.0  ;;  %v232_v26 = vmax.f32 %v200_v18, 0.0  ;;  %v171_v27 = vadd.f32 %v453_v23, %v338_v14  ;;  %v203_v28 = vadd.f32 %v461_v24, %v338_v14  ;;  %v162_v29 = vpop.f32.mrb[3].mxu0  ;;  %v194_v30 = vpop.f32.mrb[3].mxu1 }
  0xe1   :  { %v222_v31 = vmax.f32 %v160_v21, 0.0  ;;  %v230_v32 = vmax.f32 %v192_v22, 0.0  ;;  %v163_v33 = vadd.f32 %v338_v14, %v162_v29  ;;  %v195_v34 = vadd.f32 %v338_v14, %v194_v30 }
  0xe2   :  { %v225_v35 = vmax.f32 %v171_v27, 0.0  ;;  %v233_v36 = vmax.f32 %v203_v28, 0.0  ;;  %v240_v39 = vmin.f32 %v224_v25, 6.0  ;;  %v248_v40 = vmin.f32 %v232_v26, 6.0 }
  0xe3   :  { %v223_v37 = vmax.f32 %v163_v33, 0.0  ;;  %v231_v38 = vmax.f32 %v195_v34, 0.0  ;;  %v238_v43 = vmin.f32 %v222_v31, 6.0  ;;  %v246_v44 = vmin.f32 %v230_v32, 6.0 }
  0xe4   :  { %v241_v41 = vmin.f32 %v225_v35, 6.0  ;;  %v249_v42 = vmin.f32 %v233_v36, 6.0 }
  0xe5   :  { %v239_v45 = vmin.f32 %v223_v37, 6.0  ;;  %v247_v46 = vmin.f32 %v231_v38, 6.0  ;;  %v456_v47 = vpop.f32.mrb[4].mxu0  ;;  %v464_v48 = vpop.f32.mrb[4].mxu1 }
  0xe6   :  { %v397_v49 = vpack.c.bf16 %v241_v41, %v240_v39  ;;  %v417_v50 = vpack.c.bf16 %v249_v42, %v248_v40  ;;  %v184_v51 = vadd.f32 %v456_v47, %v338_v14  ;;  %v216_v52 = vadd.f32 %v464_v48, %v338_v14  ;;  %v175_v53 = vpop.f32.mrb[5].mxu0  ;;  %v207_v54 = vpop.f32.mrb[5].mxu1 }
  0xe7   :  { %v392_v55 = vpack.c.bf16 %v239_v45, %v238_v43  ;;  %v412_v56 = vpack.c.bf16 %v247_v46, %v246_v44  ;;  %v176_v57 = vadd.f32 %v338_v14, %v175_v53  ;;  %v208_v58 = vadd.f32 %v338_v14, %v207_v54  ;;  %v457_v59 = vpop.f32.mrb[6].mxu0  ;;  %v465_v60 = vpop.f32.mrb[6].mxu1 }
  0xe8   :  { %429 = vst [vmem:[%s570_s3 + $0x8] sm:$0xff] %v397_v49   ;;  %433 = vst [vmem:[%s570_s3 + $0x28] sm:$0xff] %v417_v50   ;;  %v228_v61 = vmax.f32 %v184_v51, 0.0  ;;  %v236_v62 = vmax.f32 %v216_v52, 0.0  ;;  %v187_v63 = vadd.f32 %v457_v59, %v338_v14  ;;  %v219_v0 = vadd.f32 %v465_v60, %v338_v14  ;;  %v178_v1 = vpop.f32.mrb[7].mxu0  ;;  %v210_v2 = vpop.f32.mrb[7].mxu1 }
  0xe9   :  { %393 = vst [vmem:[%s570_s3] sm:$0xff] %v392_v55   ;;  %432 = vst [vmem:[%s570_s3 + $0x20] sm:$0xff] %v412_v56   ;;  %v226_v3 = vmax.f32 %v176_v57, 0.0  ;;  %v234_v4 = vmax.f32 %v208_v58, 0.0  ;;  %v179_v5 = vadd.f32 %v338_v14, %v178_v1  ;;  %v211_v6 = vadd.f32 %v338_v14, %v210_v2 }
  0xea   :  { %v229_v7 = vmax.f32 %v187_v63, 0.0  ;;  %v237_v8 = vmax.f32 %v219_v0, 0.0  ;;  %v244_v11 = vmin.f32 %v228_v61, 6.0  ;;  %v252_v12 = vmin.f32 %v236_v62, 6.0 }
  0xeb   :  { %v227_v9 = vmax.f32 %v179_v5, 0.0  ;;  %v235_v10 = vmax.f32 %v211_v6, 0.0  ;;  %v242_v16 = vmin.f32 %v226_v3, 6.0  ;;  %v250_v17 = vmin.f32 %v234_v4, 6.0 }
  0xec   :  { %v245_v13 = vmin.f32 %v229_v7, 6.0  ;;  %v253_v15 = vmin.f32 %v237_v8, 6.0 }
  0xed   :  { %v243_v18 = vmin.f32 %v227_v9, 6.0  ;;  %v251_v19 = vmin.f32 %v235_v10, 6.0 }
  0xee   :  { %v407_v20 = vpack.c.bf16 %v245_v13, %v244_v11  ;;  %v427_v21 = vpack.c.bf16 %v253_v15, %v252_v12 }
  0xef   :  { %v402_v22 = vpack.c.bf16 %v243_v18, %v242_v16  ;;  %v422_v23 = vpack.c.bf16 %v251_v19, %v250_v17 }
  0xf0   :  { %431 = vst [vmem:[%s570_s3 + $0x18] sm:$0xff] %v407_v20   ;;  %435 = vst [vmem:[%s570_s3 + $0x38] sm:$0xff] %v427_v21  }
  0xf1   :  { %430 = vst [vmem:[%s570_s3 + $0x10] sm:$0xff] %v402_v22   ;;  %434 = vst [vmem:[%s570_s3 + $0x30] sm:$0xff] %v422_v23  }

// kernel: early_exit_mobilenet_forward.5
= control target key start
LH: loop header
LB: loop body
LE: loop exit
PB: predicated region body
PF: predicated region fallthrough
CT: control target
= control target key end

     0   :  { %v26_v27 = vlaneseq  ;;  %v1246_v35 = vmov 1983009808   ;;  %s1538_s0 = inlined_call_operand.vmem [shape: f32[2,1280], index: 0, kind: input, shape index: {}]   ;;  %s1539_s1 = inlined_call_operand.vmem [shape: bf16[1280,128], index: 1, kind: input, shape index: {}]   ;;  %s1540_s2 = inlined_call_operand.vmem [shape: f32[1,128], index: 2, kind: input, shape index: {}]   ;;  %s1541_s3 = inlined_call_operand.hbm [shape: f32[2,128], index: 3, kind: output, shape index: {}]  }
   0x1   :  { %v1140_v0 = vld [vmem:[%s1539_s1 + $0x40] sm:$0xff]   ;;  %v1144_v4 = vld [vmem:[%s1539_s1 + $0x48] sm:$0xff]   ;;  %v1148_v8 = vld [vmem:[%s1539_s1 + $0x50] sm:$0xff]   ;;  %v24_v36 = vunpack.c.l.s4 %v1246_v35 }
   0x2   :  { %v1141_v1 = vld [vmem:[%s1539_s1] sm:$0xff]   ;;  %1028 = vmatprep.subr.bf16.mxu0 %v1140_v0  ;;  %v1145_v5 = vld [vmem:[%s1539_s1 + $0x8] sm:$0xff]   ;;  %v1149_v9 = vld [vmem:[%s1539_s1 + $0x10] sm:$0xff]   ;;  %v27_v32 = vshrl.u32 %v26_v27, 7 }
   0x3   :  { %v1142_v2 = vld [vmem:[%s1539_s1 + $0xc0] sm:$0xff]   ;;  %1029 = vmatpush3.bf16.msra.mxu0 %v1141_v1  ;;  %v1146_v6 = vld [vmem:[%s1539_s1 + $0xc8] sm:$0xff]   ;;  %v1150_v10 = vld [vmem:[%s1539_s1 + $0xd0] sm:$0xff]   ;;  %v25_v38 = vunpack.c.0.s8 %v24_v36 }
   0x4   :  { %v1143_v3 = vld [vmem:[%s1539_s1 + $0x80] sm:$0xff]   ;;  %1050 = vmatprep.subr.bf16.mxu1 %v1142_v2  ;;  %1030 = vmatprep.subr.bf16.mxu0 %v1144_v4  ;;  %v1147_v7 = vld [vmem:[%s1539_s1 + $0x88] sm:$0xff]   ;;  %v1151_v11 = vld [vmem:[%s1539_s1 + $0x90] sm:$0xff]  }
   0x5   :  { %1051 = vmatpush3.bf16.msra.mxu1 %v1143_v3  ;;  %v1152_v12 = vld [vmem:[%s1539_s1 + $0x58] sm:$0xff]   ;;  %v1156_v16 = vld [vmem:[%s1539_s1 + $0x60] sm:$0xff]   ;;  %v1160_v20 = vld [vmem:[%s1539_s1 + $0x68] sm:$0xff]   ;;  %v1373_v41 = vsub.s32 %v25_v38, %v27_v32 }
   0x6   :  { %1052 = vmatprep.subr.bf16.mxu1 %v1146_v6  ;;  %v1153_v13 = vld [vmem:[%s1539_s1 + $0x18] sm:$0xff]   ;;  %v1157_v17 = vld [vmem:[%s1539_s1 + $0x20] sm:$0xff]   ;;  %v1161_v21 = vld [vmem:[%s1539_s1 + $0x28] sm:$0xff]  }
   0x7   :  { %1031 = vmatpush3.bf16.msra.mxu0 %v1145_v5  ;;  %v1154_v14 = vld [vmem:[%s1539_s1 + $0xd8] sm:$0xff]   ;;  %v1158_v18 = vld [vmem:[%s1539_s1 + $0xe0] sm:$0xff]   ;;  %v1162_v22 = vld [vmem:[%s1539_s1 + $0xe8] sm:$0xff]  }
   0x8   :  { %1032 = vmatprep.subr.bf16.mxu0 %v1148_v8  ;;  %v1155_v15 = vld [vmem:[%s1539_s1 + $0x98] sm:$0xff]   ;;  %v1159_v19 = vld [vmem:[%s1539_s1 + $0xa0] sm:$0xff]   ;;  %v1163_v23 = vld [vmem:[%s1539_s1 + $0xa8] sm:$0xff]  }
   0x9   :  { %1053 = vmatpush3.bf16.msra.mxu1 %v1147_v7  ;;  %v1164_v24 = vld [vmem:[%s1539_s1 + $0x70] sm:$0xff]   ;;  %v1168_v29 = vld [vmem:[%s1539_s1 + $0x78] sm:$0xff]   ;;  %v16_v33 = vld [vmem:[%s1538_s0] sm:$0xff] }
   0xa   :  { %1054 = vmatprep.subr.bf16.mxu1 %v1150_v10  ;;  %v1165_v25 = vld [vmem:[%s1539_s1 + $0x30] sm:$0xff]   ;;  %v1169_v30 = vld [vmem:[%s1539_s1 + $0x38] sm:$0xff]   ;;  %v1172_v37 = vld [vmem:[%s1539_s1 + $0x140] sm:$0xff]   ;;  %v22_v39 = vcombine.high %v16_v33, %v16_v33  ;;  %v29_v42 = vrot.slane %v16_v33, %v1373_v41 }
   0xb   :  { %1033 = vmatpush3.bf16.msra.mxu0 %v1149_v9  ;;  %v1166_v26 = vld [vmem:[%s1539_s1 + $0xf0] sm:$0xff]   ;;  %v1170_v31 = vld [vmem:[%s1539_s1 + $0xf8] sm:$0xff]   ;;  %v1175_v40 = vld [vmem:[%s1539_s1 + $0x1c0] sm:$0xff]  }
   0xc   :  { %1034 = vmatprep.subr.bf16.mxu0 %v1152_v12  ;;  %v1167_v28 = vld [vmem:[%s1539_s1 + $0xb0] sm:$0xff]   ;;  %v1171_v34 = vld [vmem:[%s1539_s1 + $0xb8] sm:$0xff]   ;;  %v36_v43 = vrot.slane %v22_v39, %v1373_v41  ;;  %v37_v44 = vcombine.high %v29_v42, %v29_v42  ;;  %v1174_v46 = vld [vmem:[%s1539_s1 + $0x100] sm:$0xff]   ;;  %v74_v47 = vpack.c.bf16 %v29_v42, %v29_v42 }
   0xd   :  { %1055 = vmatpush3.bf16.msra.mxu1 %v1151_v11  ;;  %v1176_v49 = vld [vmem:[%s1539_s1 + $0x180] sm:$0xff]   ;;  %v1177_v52 = vld [vmem:[%s1539_s1 + $0x148] sm:$0xff]   ;;  %v1181_v56 = vld [vmem:[%s1539_s1 + $0x150] sm:$0xff]  }
   0xe   :  { %1056 = vmatprep.subr.bf16.mxu1 %v1154_v14  ;;  %v38_v45 = vcombine.high %v36_v43, %v36_v43  ;;  %v76_v48 = vpack.c.bf16 %v36_v43, %v36_v43  ;;  %v75_v50 = vpack.c.bf16 %v37_v44, %v37_v44  ;;  %v1179_v53 = vld [vmem:[%s1539_s1 + $0x1c8] sm:$0xff]   ;;  %v1183_v57 = vld [vmem:[%s1539_s1 + $0x1d0] sm:$0xff]   ;;  %v1185_v60 = vld [vmem:[%s1539_s1 + $0x158] sm:$0xff]  }
   0xf   :  { %1035 = vmatpush3.bf16.msra.mxu0 %v1153_v13  ;;  %v1178_v54 = vld [vmem:[%s1539_s1 + $0x108] sm:$0xff]   ;;  %v1182_v58 = vld [vmem:[%s1539_s1 + $0x110] sm:$0xff]   ;;  %v1187_v61 = vld [vmem:[%s1539_s1 + $0x1d8] sm:$0xff]  }
  0x10   :  { %1036 = vmatprep.subr.bf16.mxu0 %v1156_v16  ;;  %v77_v51 = vpack.c.bf16 %v38_v45, %v38_v45  ;;  %763 = vmatprep.mubr.bf16.mxu0 %v75_v50  ;;  %v1180_v55 = vld [vmem:[%s1539_s1 + $0x188] sm:$0xff]   ;;  %v1184_v59 = vld [vmem:[%s1539_s1 + $0x190] sm:$0xff]   ;;  %v1186_v62 = vld [vmem:[%s1539_s1 + $0x118] sm:$0xff]  }
  0x11   :  { %1057 = vmatpush3.bf16.msra.mxu1 %v1155_v15  ;;  %v1188_v63 = vld [vmem:[%s1539_s1 + $0x198] sm:$0xff]   ;;  %v1189_v0 = vld [vmem:[%s1539_s1 + $0x160] sm:$0xff]   ;;  %v1193_v4 = vld [vmem:[%s1539_s1 + $0x168] sm:$0xff]  }
  0x12   :  { %1058 = vmatprep.subr.bf16.mxu1 %v1158_v18  ;;  %803 = vmatprep.mubr.bf16.mxu1 %v77_v51  ;;  %v1191_v1 = vld [vmem:[%s1539_s1 + $0x1e0] sm:$0xff]   ;;  %v1195_v5 = vld [vmem:[%s1539_s1 + $0x1e8] sm:$0xff]   ;;  %v1197_v8 = vld [vmem:[%s1539_s1 + $0x170] sm:$0xff]  }
  0x13   :  { %1037 = vmatpush3.bf16.msra.mxu0 %v1157_v17  ;;  %v1190_v2 = vld [vmem:[%s1539_s1 + $0x120] sm:$0xff]   ;;  %v1194_v6 = vld [vmem:[%s1539_s1 + $0x128] sm:$0xff]   ;;  %v1199_v9 = vld [vmem:[%s1539_s1 + $0x1f0] sm:$0xff]  }
  0x14   :  { %1038 = vmatprep.subr.bf16.mxu0 %v1160_v20  ;;  %v1192_v3 = vld [vmem:[%s1539_s1 + $0x1a0] sm:$0xff]   ;;  %v1196_v7 = vld [vmem:[%s1539_s1 + $0x1a8] sm:$0xff]   ;;  %v1198_v11 = vld [vmem:[%s1539_s1 + $0x130] sm:$0xff]  }
  0x15   :  { %1059 = vmatpush3.bf16.msra.mxu1 %v1159_v19  ;;  %v17_v10 = vld [vmem:[%s1538_s0 + $0x8] sm:$0xff]  ;;  %v1200_v14 = vld [vmem:[%s1539_s1 + $0x1b0] sm:$0xff]   ;;  %v1201_v15 = vld [vmem:[%s1539_s1 + $0x178] sm:$0xff]  }
  0x16   :  { %1060 = vmatprep.subr.bf16.mxu1 %v1162_v22  ;;  %v46_v12 = vrot.slane %v17_v10, %v1373_v41  ;;  %v39_v13 = vcombine.high %v17_v10, %v17_v10  ;;  %v1203_v18 = vld [vmem:[%s1539_s1 + $0x1f8] sm:$0xff]   ;;  %v1207_v27 = vld [vmem:[%s1539_s1 + $0x200] sm:$0xff]  }
  0x17   :  { %1039 = vmatpush3.bf16.msra.mxu0 %v1161_v21  ;;  %v1202_v21 = vld [vmem:[%s1539_s1 + $0x138] sm:$0xff]  }
  0x18   :  { %1040 = vmatprep.subr.bf16.mxu0 %v1164_v24  ;;  %v54_v16 = vcombine.high %v46_v12, %v46_v12  ;;  %v53_v17 = vrot.slane %v39_v13, %v1373_v41  ;;  %v1204_v22 = vld [vmem:[%s1539_s1 + $0x1b8] sm:$0xff]   ;;  %v1205_v24 = vld [vmem:[%s1539_s1 + $0x240] sm:$0xff]  }
  0x19   :  { %1061 = vmatpush3.bf16.msra.mxu1 %v1163_v23 }
  0x1a   :  { %1062 = vmatprep.subr.bf16.mxu1 %v1166_v26  ;;  %v79_v19 = vpack.c.bf16 %v54_v16, %v54_v16  ;;  %v55_v20 = vcombine.high %v53_v17, %v53_v17  ;;  %v80_v26 = vpack.c.bf16 %v53_v17, %v53_v17 }
  0x1b   :  { %1041 = vmatpush3.bf16.msra.mxu0 %v1165_v25  ;;  %v78_v25 = vpack.c.bf16 %v46_v12, %v46_v12 }
  0x1c   :  { %1042 = vmatprep.subr.bf16.mxu0 %v1168_v29  ;;  %v81_v23 = vpack.c.bf16 %v55_v20, %v55_v20  ;;  %v1209_v29 = vld [vmem:[%s1539_s1 + $0x208] sm:$0xff]  }
  0x1d   :  { %1063 = vmatpush3.bf16.msra.mxu1 %v1167_v28  ;;  %v1208_v28 = vld [vmem:[%s1539_s1 + $0x248] sm:$0xff]  }
  0x1e   :  { %1064 = vmatprep.subr.bf16.mxu1 %v1170_v31 }
  0x1f   :  { %1043 = vmatpush3.bf16.msra.mxu0 %v1169_v30  ;;  %v1210_v30 = vld [vmem:[%s1539_s1 + $0x250] sm:$0xff]  }
  0x20   :  { %1072 = vmatprep.subr.bf16.mxu0 %v1172_v37 }
  0x21   :  { %1065 = vmatpush3.bf16.msra.mxu1 %v1171_v34 }
  0x22   :  { %1094 = vmatprep.subr.bf16.mxu1 %v1175_v40  ;;  %764 = vmatmul.mubr.bf16.vlgmr.msra.gmra.mrb[0].mxu0 %v74_v47 }
  0x23   :  { %1073 = vmatpush3.bf16.msra.mxu0 %v1174_v46  ;;  %843 = vmatprep.mubr.bf16.mxu0 %v79_v19 }
  0x24   :  { %804 = vmatmul.mubr.bf16.vlgmr.msra.gmra.mrb[0].mxu1 %v76_v48  ;;  %1074 = vmatprep.subr.bf16.mxu0 %v1177_v52 }
  0x25   :  { %1095 = vmatpush3.bf16.msra.mxu1 %v1176_v49  ;;  %883 = vmatprep.mubr.bf16.mxu1 %v81_v23 }
  0x26   :  { %1096 = vmatprep.subr.bf16.mxu1 %v1179_v53 }
  0x27   :  { %1075 = vmatpush3.bf16.msra.mxu0 %v1178_v54 }
  0x28   :  { %1076 = vmatprep.subr.bf16.mxu0 %v1181_v56 }
  0x29   :  { %1097 = vmatpush3.bf16.msra.mxu1 %v1180_v55 }
  0x2a   :  { %1098 = vmatprep.subr.bf16.mxu1 %v1183_v57 }
  0x2b   :  { %1077 = vmatpush3.bf16.msra.mxu0 %v1182_v58 }
  0x2c   :  { %1078 = vmatprep.subr.bf16.mxu0 %v1185_v60 }
  0x2d   :  { %1099 = vmatpush3.bf16.msra.mxu1 %v1184_v59 }
  0x2e   :  { %1100 = vmatprep.subr.bf16.mxu1 %v1187_v61 }
  0x2f   :  { %1079 = vmatpush3.bf16.msra.mxu0 %v1186_v62 }
  0x30   :  { %1080 = vmatprep.subr.bf16.mxu0 %v1189_v0 }
  0x31   :  { %1101 = vmatpush3.bf16.msra.mxu1 %v1188_v63 }
  0x32   :  { %1102 = vmatprep.subr.bf16.mxu1 %v1191_v1 }
  0x33   :  { %1081 = vmatpush3.bf16.msra.mxu0 %v1190_v2 }
  0x34   :  { %1082 = vmatprep.subr.bf16.mxu0 %v1193_v4 }
  0x35   :  { %1103 = vmatpush3.bf16.msra.mxu1 %v1192_v3 }
  0x36   :  { %1104 = vmatprep.subr.bf16.mxu1 %v1195_v5 }
  0x37   :  { %1083 = vmatpush3.bf16.msra.mxu0 %v1194_v6 }
  0x38   :  { %1084 = vmatprep.subr.bf16.mxu0 %v1197_v8 }
  0x39   :  { %1105 = vmatpush3.bf16.msra.mxu1 %v1196_v7 }
  0x3a   :  { %1106 = vmatprep.subr.bf16.mxu1 %v1199_v9 }
  0x3b   :  { %1085 = vmatpush3.bf16.msra.mxu0 %v1198_v11 }
  0x3c   :  { %1086 = vmatprep.subr.bf16.mxu0 %v1201_v15 }
  0x3d   :  { %1107 = vmatpush3.bf16.msra.mxu1 %v1200_v14 }
  0x3e   :  { %1108 = vmatprep.subr.bf16.mxu1 %v1203_v18 }
  0x3f   :  { %1087 = vmatpush3.bf16.msra.mxu0 %v1202_v21 }
  0x40   :  { %1116 = vmatprep.subr.bf16.mxu0 %v1205_v24 }
  0x41   :  { %1109 = vmatpush3.bf16.msra.mxu1 %v1204_v22 }
  0x42   :  { %844 = vmatmul.mubr.bf16.vlgmr.msra.gmra.mrb[4].mxu0 %v78_v25 }
  0x43   :  { %1117 = vmatpush3.bf16.msra.mxu0 %v1207_v27 }
  0x44   :  { %884 = vmatmul.mubr.bf16.vlgmr.msra.gmra.mrb[4].mxu1 %v80_v26  ;;  %1118 = vmatprep.subr.bf16.mxu0 %v1208_v28 }
  0x45   :  { %8 = vsyncpa [#allocation3], 0  ;;  %v946_v31 = vld.sshfl [vmem:[%s1538_s0 + $0x10] sm:$0x33 pattern:$0x76325410] }
  0x46   :  { %v1211_v32 = vld [vmem:[%s1539_s1 + $0x210] sm:$0xff]   ;;  %v63_v33 = vcombine.high %v946_v31, %v946_v31  ;;  %v1212_v34 = vld [vmem:[%s1539_s1 + $0x258] sm:$0xff]   ;;  %v1214_v37 = vld [vmem:[%s1539_s1 + $0x260] sm:$0xff]   ;;  %v82_v45 = vpack.c.bf16 %v946_v31, %v946_v31 }
  0x47   :  { %1119 = vmatpush3.bf16.msra.mxu0 %v1209_v29  ;;  %v1213_v36 = vld [vmem:[%s1539_s1 + $0x218] sm:$0xff]   ;;  %v1215_v38 = vld [vmem:[%s1539_s1 + $0x220] sm:$0xff]   ;;  %v1216_v39 = vld [vmem:[%s1539_s1 + $0x268] sm:$0xff]  }
  0x48   :  { %1120 = vmatprep.subr.bf16.mxu0 %v1210_v30  ;;  %v83_v35 = vpack.c.bf16 %v63_v33, %v63_v33  ;;  %v1217_v40 = vld [vmem:[%s1539_s1 + $0x228] sm:$0xff]   ;;  %v1218_v41 = vld [vmem:[%s1539_s1 + $0x270] sm:$0xff]   ;;  %v1220_v43 = vld [vmem:[%s1539_s1 + $0x278] sm:$0xff]  }
  0x49   :  { %v1219_v42 = vld [vmem:[%s1539_s1 + $0x230] sm:$0xff]   ;;  %v1221_v44 = vld [vmem:[%s1539_s1 + $0x238] sm:$0xff]   ;;  %v947_v48 = vld [vmem:[%s1540_s2] ss:$0 sm:$0xff]  ;;  %s1247_s1 = smov [#allocation2]  }
  0x4a   :  { %923 = vmatprep.mubr.bf16.mxu0 %v83_v35  ;;  %s938_s2 = sshll.u32 %s1247_s1, 4  ;;  %s939_s2 = int_to_ptr.vmem [resolvable:$true] %s938_s2 }
  0x4b   :  { %1121 = vmatpush3.bf16.msra.mxu0 %v1211_v32  ;;  %s1222_s17 = scalar_lea.vmem %s939_s2, 32  ;;  %p1227_p1 = scmp.lt.s32.totalorder %s939_s2, %s939_s2 }
  0x4c   :  { %1122 = vmatprep.subr.bf16.mxu0 %v1212_v34  ;;  %p1223_p0 = scmp.ne.s32.totalorder %s939_s2, %s1222_s17  ;;  %p1228_p2 = scmp.lt.s32.totalorder %s1222_s17, %s1222_s17 }
  0x4e   :  { %p1229_p3 = por %p1228_p2, %p1227_p1 }
  0x4f   :  { %1123 = vmatpush3.bf16.msra.mxu0 %v1213_v36 }
  0x50   :  { %1124 = vmatprep.subr.bf16.mxu0 %v1214_v37  ;;  %p1230_p4 = pnand %p1229_p3, %p1223_p0 }
  0x53   :  { %1125 = vmatpush3.bf16.msra.mxu0 %v1215_v38 }
  0x54   :  { %1126 = vmatprep.subr.bf16.mxu0 %v1216_v39 }
  0x57   :  { %1127 = vmatpush3.bf16.msra.mxu0 %v1217_v40 }
  0x58   :  { %1128 = vmatprep.subr.bf16.mxu0 %v1218_v41 }
  0x5b   :  { %1129 = vmatpush3.bf16.msra.mxu0 %v1219_v42 }
  0x5c   :  { %1130 = vmatprep.subr.bf16.mxu0 %v1220_v43 }
  0x5f   :  { %1131 = vmatpush3.bf16.msra.mxu0 %v1221_v44 }
  0x62   :  { %924 = vmatmul.mubr.bf16.vlgmr.msra.gmra.mrb[8].mxu0 %v82_v45 }
  0xf5   :  { %v1044_v46 = vpop.f32.mrb[0].mxu0 }
  0xf6   :  { %v1045_v49 = vpop.f32.mrb[1].mxu0 }
  0xf7   :  { %v1066_v47 = vpop.f32.mrb[0].mxu1  ;;  %v1046_v51 = vadd.f32 %v1045_v49, %v1044_v46  ;;  %v1047_v52 = vpop.f32.mrb[2].mxu0 }
  0xf8   :  { %v1067_v50 = vpop.f32.mrb[1].mxu1  ;;  %v1048_v55 = vpop.f32.mrb[3].mxu0 }
  0xf9   :  { %v1068_v53 = vadd.f32 %v1067_v50, %v1066_v47  ;;  %v1069_v54 = vpop.f32.mrb[2].mxu1  ;;  %v766_v57 = vadd.f32 %v1046_v51, %v947_v48 }
  0xfa   :  { %v1070_v56 = vpop.f32.mrb[3].mxu1 }
  0xfb   :  { %v806_v58 = vadd.f32 %v1068_v53, %v766_v57 }
 0x115   :  { %v1088_v59 = vpop.f32.mrb[4].mxu0 }
 0x116   :  { %v1089_v61 = vpop.f32.mrb[5].mxu0 }
 0x117   :  { %v1110_v60 = vpop.f32.mrb[4].mxu1  ;;  %v1090_v63 = vadd.f32 %v1089_v61, %v1088_v59  ;;  %v1091_v0 = vpop.f32.mrb[6].mxu0 }
 0x118   :  { %v1111_v62 = vpop.f32.mrb[5].mxu1  ;;  %v1092_v3 = vpop.f32.mrb[7].mxu0 }
 0x119   :  { %v1112_v1 = vadd.f32 %v1111_v62, %v1110_v60  ;;  %v1113_v2 = vpop.f32.mrb[6].mxu1  ;;  %v846_v5 = vadd.f32 %v1090_v63, %v806_v58 }
 0x11a   :  { %v1114_v4 = vpop.f32.mrb[7].mxu1 }
 0x11b   :  { %v886_v6 = vadd.f32 %v1112_v1, %v846_v5 }
 0x135   :  { %v1132_v7 = vpop.f32.mrb[8].mxu0 }
 0x136   :  { %v1133_v8 = vpop.f32.mrb[9].mxu0 }
 0x137   :  { %v1134_v9 = vadd.f32 %v1133_v8, %v1132_v7  ;;  %v1135_v10 = vpop.f32.mrb[10].mxu0 }
 0x138   :  { %v1136_v11 = vpop.f32.mrb[11].mxu0 }
 0x139   :  { %v926_v12 = vadd.f32 %v1134_v9, %v886_v6 }
 0x13b   :  { %931 = vst [vmem:[#allocation2] sm:$0x3] %v926_v12 }
 0x13c   :  { %1233 = shalt.err (!%p1230_p4)
}
 0x13d   :  { %s1234_s20 = scalar_lea.hbm %s1541_s3, 32 }
 0x13e   :  { %p1235_p5 = scmp.ne.s32.totalorder %s1541_s3, %s1234_s20  ;;  %p1238_p6 = scmp.lt.u32.totalorder %s1234_s20, %s1541_s3 }
 0x140   :  { %p1240_p7 = pnand %p1238_p6, %p1235_p5 }
 0x142   :  { %1243 = shalt.err (!%p1240_p7)
}
 0x143   :  { %941 = dma.vmem_to_hbm [thread:$0]  %s939_s2, 32, %s1541_s3, [#allocation3]  }
 0x144   :  { %1244 = dma.done.wait [#allocation3], 32  }
 0x145   :  { %1245 = vsyncadd [#allocation3], 4294967264 }
 0x146   :  { %945 = vsyncpa [#allocation3], 1 }

// kernel: early_exit_mobilenet_forward.4
= control target key start
LH: loop header
LB: loop body
LE: loop exit
PB: predicated region body
PF: predicated region fallthrough
CT: control target
= control target key end

     0   :  { %s1900_s12 = smov 0   ;;  %s1902_s13 = smov 0   ;;  %s2389_s0 = inlined_call_operand.vmem [shape: bf16[2,64,128], index: 0, kind: input, shape index: {}]   ;;  %s2390_s1 = inlined_call_operand.vmem [shape: bf16[128,1280], index: 1, kind: input, shape index: {}]   ;;  %s2391_s2 = inlined_call_operand.vmem [shape: f32[1,1280], index: 2, kind: input, shape index: {}]   ;;  %s2392_s3 = inlined_call_operand.vmem [shape: f32[2,1,1280], index: 3, kind: output, shape index: {}]  }
   0x1   :  { %s1904_s14 = smov 0  }
   0x2 LB: > { %s25_s15 = sadd.s32 1, %s1871_s13  ;;  %p1595_p0 = scmp.ge.s32.totalorder %s1875_s14, 1  ;;  %s1875_s14 = sphi %s1904_s14, %s13_s14   ;;  %s1871_s13 = sphi %s1902_s13, %s2396_s13   ;;  %s1867_s12 = sphi %s1900_s12, %s2395_s12  }
   0x3   : > { %p27_p1 = scmp.ge.s32.totalorder %s25_s15, 2  ;;  %p156_p2 = scmp.lt.s32.totalorder %s1875_s14, 3 }
   0x5   : > { %s2398_s15 = smov (%p27_p1, %s25_s15), 0  ;;  %p157_p3 = pnand %p1595_p0, %p156_p2 }
   0x6   : > { %v1729_v0 = vld [vmem:[%s2390_s1 + $0x4] ss:$40 sps:$4 sm:$0xff] (!%p157_p3)   ;;  %v1877_v2 = vmov (!%p157_p3), 0   ;;  %v1733_v3 = vld [vmem:[%s2390_s1] ss:$40 sps:$4 sm:$0xff] (!%p157_p3)   ;;  %p184_p4 = scmp.lt.s32.totalorder (!%p157_p3), %s1867_s12, 1 }
   0x7   : > { %160 = sbr.rel (%p157_p3) target bundleno = 383 (0x17f), region = 32  ;;  %v1731_v1 = vld [vmem:[%s2390_s1 + $0xc] ss:$40 sps:$4 sm:$0xff] (!%p157_p3)   ;;  %806 = vmatprep.mubr.bf16.mxu0 (!%p157_p3), %v1877_v2  ;;  %879 = vmatprep.mubr.bf16.mxu1 (!%p157_p3), %v1877_v2  ;;  %v1734_v4 = vld [vmem:[%s2390_s1 + $0x8] ss:$40 sps:$4 sm:$0xff] (!%p157_p3)  }
   0x8   : > { %774 = vmatprep.subr.bf16.mxu0 (!%p157_p3), %v1729_v0  ;;  %847 = vmatprep.subr.bf16.mxu1 (!%p157_p3), %v1731_v1  ;;  %v1735_v5 = vld [vmem:[%s2390_s1 + $0x54] ss:$40 sps:$4 sm:$0xff] (!%p157_p3)   ;;  %v1739_v7 = vld [vmem:[%s2390_s1 + $0x50] ss:$40 sps:$4 sm:$0xff] (!%p157_p3)   ;;  %v1741_v9 = vld [vmem:[%s2390_s1 + $0xa4] ss:$40 sps:$4 sm:$0xff] (!%p157_p3)  }
   0x9   : > { %775 = vmatpush1.bf16.msra.mxu0 (!%p157_p3), %v1733_v3  ;;  %848 = vmatpush1.bf16.msra.mxu1 (!%p157_p3), %v1734_v4  ;;  %v1737_v6 = vld [vmem:[%s2390_s1 + $0x5c] ss:$40 sps:$4 sm:$0xff] (!%p157_p3)   ;;  %v1740_v8 = vld [vmem:[%s2390_s1 + $0x58] ss:$40 sps:$4 sm:$0xff] (!%p157_p3)   ;;  %v1743_v10 = vld [vmem:[%s2390_s1 + $0xac] ss:$40 sps:$4 sm:$0xff] (!%p157_p3)  }
   0xa   : > { %776 = vmatprep.subr.bf16.mxu0 (!%p157_p3), %v1735_v5  ;;  %849 = vmatprep.subr.bf16.mxu1 (!%p157_p3), %v1737_v6  ;;  %v1745_v11 = vld [vmem:[%s2390_s1 + $0xa0] ss:$40 sps:$4 sm:$0xff] (!%p157_p3)   ;;  %v1747_v13 = vld [vmem:[%s2390_s1 + $0xf4] ss:$40 sps:$4 sm:$0xff] (!%p157_p3)   ;;  %v1751_v15 = vld [vmem:[%s2390_s1 + $0xf0] ss:$40 sps:$4 sm:$0xff] (!%p157_p3)  }
   0xb   : > { %v1746_v12 = vld [vmem:[%s2390_s1 + $0xa8] ss:$40 sps:$4 sm:$0xff] (!%p157_p3)   ;;  %v1749_v14 = vld [vmem:[%s2390_s1 + $0xfc] ss:$40 sps:$4 sm:$0xff] (!%p157_p3)   ;;  %v1752_v16 = vld [vmem:[%s2390_s1 + $0xf8] ss:$40 sps:$4 sm:$0xff] (!%p157_p3)  }
   0xc   : > { %v1753_v17 = vld [vmem:[%s2390_s1 + $0x144] ss:$40 sps:$4 sm:$0xff] (!%p157_p3)   ;;  %v1757_v19 = vld [vmem:[%s2390_s1 + $0x140] ss:$40 sps:$4 sm:$0xff] (!%p157_p3)   ;;  %v1759_v21 = vld [vmem:[%s2390_s1 + $0x194] ss:$40 sps:$4 sm:$0xff] (!%p157_p3)  }
   0xd   : > { %777 = vmatpush1.bf16.msra.mxu0 (!%p157_p3), %v1739_v7  ;;  %850 = vmatpush1.bf16.msra.mxu1 (!%p157_p3), %v1740_v8  ;;  %v1755_v18 = vld [vmem:[%s2390_s1 + $0x14c] ss:$40 sps:$4 sm:$0xff] (!%p157_p3)   ;;  %v1758_v20 = vld [vmem:[%s2390_s1 + $0x148] ss:$40 sps:$4 sm:$0xff] (!%p157_p3)   ;;  %v1761_v22 = vld [vmem:[%s2390_s1 + $0x19c] ss:$40 sps:$4 sm:$0xff] (!%p157_p3)  }
   0xe   : > { %778 = vmatprep.subr.bf16.mxu0 %v1741_v9  ;;  %851 = vmatprep.subr.bf16.mxu1 %v1743_v10  ;;  %s2400_s12 = smov (!%p184_p4, %s1867_s12), 1  ;;  %v1763_v23 = vld [vmem:[%s2390_s1 + $0x190] ss:$40 sps:$4 sm:$0xff]   ;;  %v1765_v25 = vld [vmem:[%s2390_s1 + $0x1e4] ss:$40 sps:$4 sm:$0xff]  }
   0xf   : > { %s1684_s10 = sshll.u32 %s2400_s12, 5  ;;  %v1764_v24 = vld [vmem:[%s2390_s1 + $0x198] ss:$40 sps:$4 sm:$0xff]   ;;  %v1767_v26 = vld [vmem:[%s2390_s1 + $0x1ec] ss:$40 sps:$4 sm:$0xff]   ;;  %s1701_s26 = smul.u32 10, %s2400_s12 }
  0x10   : > { %s2005_s23 = scalar_lea.vmem %s2389_s0, %s1684_s10  ;;  %v1769_v27 = vld [vmem:[%s2390_s1 + $0x1e0] ss:$40 sps:$4 sm:$0xff]   ;;  %v1771_v29 = vld [vmem:[%s2390_s1 + $0x234] ss:$40 sps:$4 sm:$0xff]   ;;  %v1775_v31 = vld [vmem:[%s2390_s1 + $0x230] ss:$40 sps:$4 sm:$0xff]  }
  0x11   : > { %779 = vmatpush1.bf16.msra.mxu0 %v1745_v11  ;;  %852 = vmatpush1.bf16.msra.mxu1 %v1746_v12  ;;  %v1770_v28 = vld [vmem:[%s2390_s1 + $0x1e8] ss:$40 sps:$4 sm:$0xff]   ;;  %v1773_v30 = vld [vmem:[%s2390_s1 + $0x23c] ss:$40 sps:$4 sm:$0xff]   ;;  %v1776_v32 = vld [vmem:[%s2390_s1 + $0x238] ss:$40 sps:$4 sm:$0xff]   ;;  %s196_s29 = scalar_lea.vmem %s2392_s3, %s1701_s26 }
  0x12   : > { %780 = vmatprep.subr.bf16.mxu0 %v1747_v13  ;;  %853 = vmatprep.subr.bf16.mxu1 %v1749_v14  ;;  %v1780_v33 = vld [vmem:[%s2390_s1 + $0x14] ss:$40 sps:$4 sm:$0xff]   ;;  %v2035_v35 = vld [vmem:[%s2005_s23] sm:$0xff]   ;;  %v1778_v36 = vld [vmem:[%s2390_s1 + $0x10] ss:$40 sps:$4 sm:$0xff]  }
  0x13   : > { %v1783_v34 = vld [vmem:[%s2390_s1 + $0x1c] ss:$40 sps:$4 sm:$0xff]   ;;  %v1781_v37 = vld [vmem:[%s2390_s1 + $0x18] ss:$40 sps:$4 sm:$0xff]   ;;  %v1789_v39 = vld [vmem:[%s2390_s1 + $0x6c] ss:$40 sps:$4 sm:$0xff]  }
  0x14   : > { %v1786_v38 = vld [vmem:[%s2390_s1 + $0x64] ss:$40 sps:$4 sm:$0xff]   ;;  %v1784_v40 = vld [vmem:[%s2390_s1 + $0x60] ss:$40 sps:$4 sm:$0xff]   ;;  %v1793_v42 = vld [vmem:[%s2390_s1 + $0xb4] ss:$40 sps:$4 sm:$0xff]  }
  0x15   : > { %781 = vmatpush1.bf16.msra.mxu0 %v1751_v15  ;;  %854 = vmatpush1.bf16.msra.mxu1 %v1752_v16  ;;  %v1787_v41 = vld [vmem:[%s2390_s1 + $0x68] ss:$40 sps:$4 sm:$0xff]   ;;  %v1796_v43 = vld [vmem:[%s2390_s1 + $0xbc] ss:$40 sps:$4 sm:$0xff]   ;;  %v1794_v46 = vld [vmem:[%s2390_s1 + $0xb8] ss:$40 sps:$4 sm:$0xff]  }
  0x16   : > { %782 = vmatprep.subr.bf16.mxu0 %v1753_v17  ;;  %855 = vmatprep.subr.bf16.mxu1 %v1755_v18  ;;  %v2066_v44 = vld [vmem:[%s2005_s23 + $0x8] sm:$0xff]   ;;  %v1791_v45 = vld [vmem:[%s2390_s1 + $0xb0] ss:$40 sps:$4 sm:$0xff]   ;;  %v1806_v51 = vld [vmem:[%s2390_s1 + $0x154] ss:$40 sps:$4 sm:$0xff]  }
  0x17   : > { %v1799_v47 = vld [vmem:[%s2390_s1 + $0x104] ss:$40 sps:$4 sm:$0xff]   ;;  %v1797_v49 = vld [vmem:[%s2390_s1 + $0x100] ss:$40 sps:$4 sm:$0xff]   ;;  %v2097_v53 = vld [vmem:[%s2005_s23 + $0x10] sm:$0xff]  }
  0x18   : > { %v1802_v48 = vld [vmem:[%s2390_s1 + $0x10c] ss:$40 sps:$4 sm:$0xff]   ;;  %v1800_v50 = vld [vmem:[%s2390_s1 + $0x108] ss:$40 sps:$4 sm:$0xff]   ;;  %v1809_v52 = vld [vmem:[%s2390_s1 + $0x15c] ss:$40 sps:$4 sm:$0xff]  }
  0x19   : > { %783 = vmatpush1.bf16.msra.mxu0 %v1757_v19  ;;  %856 = vmatpush1.bf16.msra.mxu1 %v1758_v20  ;;  %v1804_v54 = vld [vmem:[%s2390_s1 + $0x150] ss:$40 sps:$4 sm:$0xff]   ;;  %v1812_v56 = vld [vmem:[%s2390_s1 + $0x1a4] ss:$40 sps:$4 sm:$0xff]   ;;  %v1810_v58 = vld [vmem:[%s2390_s1 + $0x1a0] ss:$40 sps:$4 sm:$0xff]  }
  0x1a   : > { %784 = vmatprep.subr.bf16.mxu0 %v1759_v21  ;;  %857 = vmatprep.subr.bf16.mxu1 %v1761_v22  ;;  %v1807_v55 = vld [vmem:[%s2390_s1 + $0x158] ss:$40 sps:$4 sm:$0xff]   ;;  %v1815_v57 = vld [vmem:[%s2390_s1 + $0x1ac] ss:$40 sps:$4 sm:$0xff]   ;;  %v1813_v59 = vld [vmem:[%s2390_s1 + $0x1a8] ss:$40 sps:$4 sm:$0xff]   ;;  %v203_v22 = vlaneseq }
  0x1b   : > { %v1819_v60 = vld [vmem:[%s2390_s1 + $0x1f4] ss:$40 sps:$4 sm:$0xff]   ;;  %v1817_v63 = vld [vmem:[%s2390_s1 + $0x1f0] ss:$40 sps:$4 sm:$0xff]   ;;  %v1825_v1 = vld [vmem:[%s2390_s1 + $0x244] ss:$40 sps:$4 sm:$0xff]  }
  0x1c   : > { %v1822_v61 = vld [vmem:[%s2390_s1 + $0x1fc] ss:$40 sps:$4 sm:$0xff]   ;;  %v1820_v0 = vld [vmem:[%s2390_s1 + $0x1f8] ss:$40 sps:$4 sm:$0xff]   ;;  %v1828_v3 = vld [vmem:[%s2390_s1 + $0x24c] ss:$40 sps:$4 sm:$0xff]  }
  0x1d   : > { %785 = vmatpush1.bf16.msra.mxu0 %v1763_v23  ;;  %858 = vmatpush1.bf16.msra.mxu1 %v1764_v24  ;;  %v2128_v62 = vld [vmem:[%s2005_s23 + $0x18] sm:$0xff]   ;;  %v1823_v4 = vld [vmem:[%s2390_s1 + $0x240] ss:$40 sps:$4 sm:$0xff]   ;;  %v1831_v6 = vld [vmem:[%s2390_s1 + $0x24] ss:$40 sps:$4 sm:$0xff]   ;;  %vm2222_vm0 = vcmp.lt.s32.totalorder %v203_v22, 256 }
  0x1e   : > { %786 = vmatprep.subr.bf16.mxu0 %v1765_v25  ;;  %859 = vmatprep.subr.bf16.mxu1 %v1767_v26  ;;  %v1826_v5 = vld [vmem:[%s2390_s1 + $0x248] ss:$40 sps:$4 sm:$0xff]   ;;  %v1834_v8 = vld [vmem:[%s2390_s1 + $0x74] ss:$40 sps:$4 sm:$0xff]   ;;  %v1837_v10 = vld [vmem:[%s2390_s1 + $0xc4] ss:$40 sps:$4 sm:$0xff]  }
  0x1f   : > { %v1829_v7 = vld [vmem:[%s2390_s1 + $0x20] ss:$40 sps:$4 sm:$0xff]   ;;  %v1832_v9 = vld [vmem:[%s2390_s1 + $0x70] ss:$40 sps:$4 sm:$0xff]   ;;  %v1840_v12 = vld [vmem:[%s2390_s1 + $0x114] ss:$40 sps:$4 sm:$0xff]  }
  0x20   : > { %v1835_v11 = vld [vmem:[%s2390_s1 + $0xc0] ss:$40 sps:$4 sm:$0xff]   ;;  %v1838_v13 = vld [vmem:[%s2390_s1 + $0x110] ss:$40 sps:$4 sm:$0xff]   ;;  %v1843_v14 = vld [vmem:[%s2390_s1 + $0x164] ss:$40 sps:$4 sm:$0xff]  }
  0x21   : > { %787 = vmatpush1.bf16.msra.mxu0 %v1769_v27  ;;  %860 = vmatpush1.bf16.msra.mxu1 %v1770_v28  ;;  %v1841_v15 = vld [vmem:[%s2390_s1 + $0x160] ss:$40 sps:$4 sm:$0xff]   ;;  %v1846_v16 = vld [vmem:[%s2390_s1 + $0x1b4] ss:$40 sps:$4 sm:$0xff]   ;;  %v1844_v17 = vld [vmem:[%s2390_s1 + $0x1b0] ss:$40 sps:$4 sm:$0xff]  }
  0x22   : > { %788 = vmatprep.subr.bf16.mxu0 %v1771_v29  ;;  %861 = vmatprep.subr.bf16.mxu1 %v1773_v30  ;;  %v1849_v18 = vld [vmem:[%s2390_s1 + $0x204] ss:$40 sps:$4 sm:$0xff]   ;;  %v1847_v19 = vld [vmem:[%s2390_s1 + $0x200] ss:$40 sps:$4 sm:$0xff]   ;;  %v1852_v20 = vld [vmem:[%s2390_s1 + $0x254] ss:$40 sps:$4 sm:$0xff]  }
  0x23   : > { %v1850_v21 = vld [vmem:[%s2390_s1 + $0x250] ss:$40 sps:$4 sm:$0xff]   ;;  %v1878_v24 = vmov 0.0   ;;  %v2228_v25 = vshrl.u32 %v203_v22, 7 }
  0x24   : > { %207 = vst.msk [vmem:[#allocation2 + $0x8] sm:$0x3] %vm2222_vm0, %v1878_v24 }
  0x25   : > { %789 = vmatpush1.bf16.msra.mxu0 %v1775_v31  ;;  %862 = vmatpush1.bf16.msra.mxu1 %v1776_v32  ;;  %v302_v26 = vsub.s32 0, %v2228_v25  ;;  %v310_v27 = vsub.s32 2, %v2228_v25  ;;  %v306_v28 = vsub.s32 1, %v2228_v25  ;;  %v314_v29 = vsub.s32 3, %v2228_v25 }
  0x26   : > { %920 = vmatprep.subr.bf16.mxu0 %v1780_v33  ;;  %993 = vmatprep.subr.bf16.mxu1 %v1783_v34  ;;  %v318_v30 = vsub.s32 4, %v2228_v25  ;;  %v322_v33 = vsub.s32 5, %v2228_v25 }
  0x28   : > { %807 = vmatmul.mubr.bf16.vlgmr.msra.gmra.mrb[0].mxu0 %v2035_v35  ;;  %880 = vmatmul.mubr.bf16.vlgmr.msra.gmra.mrb[0].mxu1 %v2035_v35 }
  0x29   : > { %921 = vmatpush1.bf16.msra.mxu0 %v1778_v36  ;;  %994 = vmatpush1.bf16.msra.mxu1 %v1781_v37  ;;  %v1879_v36 = vmov 1966171168  }
  0x2a   : > { %922 = vmatprep.subr.bf16.mxu0 %v1786_v38  ;;  %995 = vmatprep.subr.bf16.mxu1 %v1789_v39  ;;  %v1446_v37 = vunpack.c.l.s4 %v1879_v36 }
  0x2b   : > { %816 = vmatprep.mubr.bf16.mxu0 %v1877_v2  ;;  %889 = vmatprep.mubr.bf16.mxu1 %v1877_v2 }
  0x2d   : > { %923 = vmatpush1.bf16.msra.mxu0 %v1784_v40  ;;  %996 = vmatpush1.bf16.msra.mxu1 %v1787_v41 }
  0x2e   : > { %924 = vmatprep.subr.bf16.mxu0 %v1793_v42  ;;  %997 = vmatprep.subr.bf16.mxu1 %v1796_v43 }
  0x30   : > { %817 = vmatmul.mubr.bf16.gmra.mrb[4].mxu0 %v2066_v44  ;;  %890 = vmatmul.mubr.bf16.gmra.mrb[4].mxu1 %v2066_v44 }
  0x31   : > { %925 = vmatpush1.bf16.msra.mxu0 %v1791_v45  ;;  %998 = vmatpush1.bf16.msra.mxu1 %v1794_v46  ;;  %v326_v46 = vsub.s32 6, %v2228_v25 }
  0x32   : > { %926 = vmatprep.subr.bf16.mxu0 %v1799_v47  ;;  %999 = vmatprep.subr.bf16.mxu1 %v1802_v48 }
  0x33   : > { %826 = vmatprep.mubr.bf16.mxu0 %v1877_v2  ;;  %899 = vmatprep.mubr.bf16.mxu1 %v1877_v2 }
  0x35   : > { %927 = vmatpush1.bf16.msra.mxu0 %v1797_v49  ;;  %1000 = vmatpush1.bf16.msra.mxu1 %v1800_v50 }
  0x36   : > { %928 = vmatprep.subr.bf16.mxu0 %v1806_v51  ;;  %1001 = vmatprep.subr.bf16.mxu1 %v1809_v52  ;;  %v1447_v51 = vunpack.c.0.s8 %v1446_v37  ;;  %v330_v52 = vsub.s32 7, %v2228_v25 }
  0x38   : > { %827 = vmatmul.mubr.bf16.gmra.mrb[8].mxu0 %v2097_v53  ;;  %900 = vmatmul.mubr.bf16.gmra.mrb[8].mxu1 %v2097_v53 }
  0x39   : > { %929 = vmatpush1.bf16.msra.mxu0 %v1804_v54  ;;  %1002 = vmatpush1.bf16.msra.mxu1 %v1807_v55 }
  0x3a   : > { %930 = vmatprep.subr.bf16.mxu0 %v1812_v56  ;;  %1003 = vmatprep.subr.bf16.mxu1 %v1815_v57 }
  0x3b   : > { %836 = vmatprep.mubr.bf16.mxu0 %v1877_v2  ;;  %909 = vmatprep.mubr.bf16.mxu1 %v1877_v2 }
  0x3d   : > { %931 = vmatpush1.bf16.msra.mxu0 %v1810_v58  ;;  %1004 = vmatpush1.bf16.msra.mxu1 %v1813_v59 }
  0x3e   : > { %932 = vmatprep.subr.bf16.mxu0 %v1819_v60  ;;  %1005 = vmatprep.subr.bf16.mxu1 %v1822_v61 }
  0x40   : > { %837 = vmatmul.mubr.bf16.gmra.mrb[12].mxu0 %v2128_v62  ;;  %910 = vmatmul.mubr.bf16.gmra.mrb[12].mxu1 %v2128_v62 }
  0x41   : > { %933 = vmatpush1.bf16.msra.mxu0 %v1817_v63  ;;  %1006 = vmatpush1.bf16.msra.mxu1 %v1820_v0 }
  0x42   : > { %934 = vmatprep.subr.bf16.mxu0 %v1825_v1  ;;  %1007 = vmatprep.subr.bf16.mxu1 %v1828_v3 }
  0x43   : > { %952 = vmatprep.mubr.bf16.mxu0 %v1877_v2  ;;  %1025 = vmatprep.mubr.bf16.mxu1 %v1877_v2 }
  0x45   : > { %935 = vmatpush1.bf16.msra.mxu0 %v1823_v4  ;;  %1008 = vmatpush1.bf16.msra.mxu1 %v1826_v5  ;;  %v2268_v4 = vld [vmem:[%s2391_s2 + $0x8] sm:$0x3] }
  0x46   : > { %1066 = vmatprep.subr.bf16.mxu0 %v1831_v6  ;;  %1685 = vmatprep.subr.bf16.mxu1 %v1831_v6 }
  0x48   : > { %953 = vmatmul.mubr.bf16.vlgmr.msra.gmra.mrb[16].mxu0 %v2035_v35  ;;  %1026 = vmatmul.mubr.bf16.vlgmr.msra.gmra.mrb[16].mxu1 %v2035_v35 }
  0x49   : > { %1067 = vmatpush1.bf16.msra.mxu0 %v1829_v7  ;;  %962 = vmatprep.mubr.bf16.mxu0 %v1877_v2 }
  0x4a   : > { %1068 = vmatprep.subr.bf16.mxu0 %v1834_v8  ;;  %1035 = vmatprep.mubr.bf16.mxu1 %v1877_v2 }
  0x4b   : > { %1693 = vmatpush1.bf16.msra.mxu1 %v1829_v7 }
  0x4c   : > { %1686 = vmatprep.subr.bf16.mxu1 %v1834_v8 }
  0x4d   : > { %1069 = vmatpush1.bf16.msra.mxu0 %v1832_v9 }
  0x4e   : > { %1070 = vmatprep.subr.bf16.mxu0 %v1837_v10 }
  0x4f   : > { %1694 = vmatpush1.bf16.msra.mxu1 %v1832_v9 }
  0x50   : > { %963 = vmatmul.mubr.bf16.gmra.mrb[20].mxu0 %v2066_v44  ;;  %1036 = vmatmul.mubr.bf16.gmra.mrb[20].mxu1 %v2066_v44 }
  0x51   : > { %1071 = vmatpush1.bf16.msra.mxu0 %v1835_v11  ;;  %1687 = vmatprep.subr.bf16.mxu1 %v1837_v10 }
  0x52   : > { %1072 = vmatprep.subr.bf16.mxu0 %v1840_v12  ;;  %972 = vmatprep.mubr.bf16.mxu0 %v1877_v2 }
  0x53   : > { %1045 = vmatprep.mubr.bf16.mxu1 %v1877_v2  ;;  %1695 = vmatpush1.bf16.msra.mxu1 %v1835_v11 }
  0x54   : > { %1688 = vmatprep.subr.bf16.mxu1 %v1840_v12  ;;  %v2273_v12 = vsub.s32 %v1447_v51, %v2228_v25 }
  0x55   : > { %1073 = vmatpush1.bf16.msra.mxu0 %v1838_v13 }
  0x56   : > { %1074 = vmatprep.subr.bf16.mxu0 %v1843_v14 }
  0x57   : > { %1696 = vmatpush1.bf16.msra.mxu1 %v1838_v13 }
  0x58   : > { %973 = vmatmul.mubr.bf16.gmra.mrb[24].mxu0 %v2097_v53  ;;  %1046 = vmatmul.mubr.bf16.gmra.mrb[24].mxu1 %v2097_v53 }
  0x59   : > { %1075 = vmatpush1.bf16.msra.mxu0 %v1841_v15  ;;  %1689 = vmatprep.subr.bf16.mxu1 %v1843_v14 }
  0x5a   : > { %1076 = vmatprep.subr.bf16.mxu0 %v1846_v16  ;;  %982 = vmatprep.mubr.bf16.mxu0 %v1877_v2 }
  0x5b   : > { %1055 = vmatprep.mubr.bf16.mxu1 %v1877_v2  ;;  %1697 = vmatpush1.bf16.msra.mxu1 %v1841_v15 }
  0x5c   : > { %1690 = vmatprep.subr.bf16.mxu1 %v1846_v16 }
  0x5d   : > { %1077 = vmatpush1.bf16.msra.mxu0 %v1844_v17 }
  0x5e   : > { %1078 = vmatprep.subr.bf16.mxu0 %v1849_v18 }
  0x5f   : > { %1698 = vmatpush1.bf16.msra.mxu1 %v1844_v17 }
  0x60   : > { %983 = vmatmul.mubr.bf16.gmra.mrb[28].mxu0 %v2128_v62  ;;  %1056 = vmatmul.mubr.bf16.gmra.mrb[28].mxu1 %v2128_v62 }
  0x61   : > { %1079 = vmatpush1.bf16.msra.mxu0 %v1847_v19  ;;  %1691 = vmatprep.subr.bf16.mxu1 %v1849_v18  ;;  %v2276_v18 = vrot.slane %v2268_v4, %v302_v26 }
  0x62   : > { %1080 = vmatprep.subr.bf16.mxu0 %v1852_v20  ;;  %1098 = vmatprep.mubr.bf16.mxu0 %v1877_v2 }
  0x63   : > { %1699 = vmatpush1.bf16.msra.mxu1 %v1847_v19  ;;  %1118 = vmatprep.mubr.bf16.mxu1 %v1877_v2 }
  0x64   : > { %1692 = vmatprep.subr.bf16.mxu1 %v1852_v20 }
  0x65   : > { %1081 = vmatpush1.bf16.msra.mxu0 %v1850_v21 }
  0x67   : > { %1700 = vmatpush1.bf16.msra.mxu1 %v1850_v21 }
  0x68   : > { %1099 = vmatmul.mubr.bf16.vlgmr.msra.gmra.mrb[32].mxu0 %v2035_v35 }
  0x69   : > { %1108 = vmatprep.mubr.bf16.mxu0 %v1877_v2 }
  0x6a   : > { %1119 = vmatmul.mubr.bf16.vlgmr.msra.gmra.mrb[32].mxu1 %v2097_v53 }
  0x6b   : > { %1128 = vmatprep.mubr.bf16.mxu1 %v1877_v2  ;;  %v296_v2 = vld [vmem:[%s2391_s2] sm:$0xff] }
  0x6c   : > { %v2238_v31 = vrot.slane %v296_v2, %v302_v26  ;;  %v2240_v32 = vrot.slane %v296_v2, %v310_v27  ;;  %v2245_v34 = vrot.slane %v296_v2, %v306_v28  ;;  %v2247_v35 = vrot.slane %v296_v2, %v314_v29 }
  0x6d   : > { %v2249_v40 = vrot.slane %v296_v2, %v318_v30  ;;  %v2253_v45 = vrot.slane %v296_v2, %v322_v33  ;;  %v2263_v3 = vrot.slane %v296_v2, %v326_v46  ;;  %v2270_v8 = vrot.slane %v296_v2, %v330_v52 }
  0x70   : > { %1109 = vmatmul.mubr.bf16.gmra.mrb[36].mxu0 %v2066_v44 }
  0x72   : > { %1129 = vmatmul.mubr.bf16.gmra.mrb[36].mxu1 %v2128_v62 }
  0xfb   : > { %v808_v38 = vpop.f32.mrb[0].mxu0  ;;  %v881_v39 = vpop.f32.mrb[0].mxu1 }
  0xfc   : > { %v809_v41 = vadd.f32 %v808_v38, %v2238_v31  ;;  %v810_v42 = vpop.f32.mrb[1].mxu0  ;;  %v882_v43 = vadd.f32 %v881_v39, %v2240_v32  ;;  %v883_v44 = vpop.f32.mrb[1].mxu1 }
  0xfd   : > { %v811_v47 = vadd.f32 %v810_v42, %v2245_v34  ;;  %v812_v48 = vpop.f32.mrb[2].mxu0  ;;  %v884_v49 = vadd.f32 %v883_v44, %v2247_v35  ;;  %v885_v50 = vpop.f32.mrb[2].mxu1 }
  0xfe   : > { %v1139_v53 = vmax.f32 %v809_v41, 0.0  ;;  %v813_v54 = vadd.f32 %v812_v48, %v2238_v31  ;;  %v814_v55 = vpop.f32.mrb[3].mxu0  ;;  %v1141_v56 = vmax.f32 %v882_v43, 0.0  ;;  %v886_v57 = vadd.f32 %v885_v50, %v2240_v32  ;;  %v887_v58 = vpop.f32.mrb[3].mxu1 }
  0xff   : > { %v1140_v59 = vmax.f32 %v811_v47, 0.0  ;;  %v815_v60 = vadd.f32 %v814_v55, %v2245_v34  ;;  %v1142_v61 = vmax.f32 %v884_v49, 0.0  ;;  %v888_v62 = vadd.f32 %v887_v58, %v2247_v35 }
 0x100   : > { %v1149_v63 = vmax.f32 %v813_v54, 0.0  ;;  %v1221_v0 = vmin.f32 %v1141_v56, 6.0  ;;  %v1151_v1 = vmax.f32 %v886_v57, 0.0  ;;  %v1219_v9 = vmin.f32 %v1139_v53, 6.0 }
 0x101   : > { %v1150_v5 = vmax.f32 %v815_v60, 0.0  ;;  %v1222_v6 = vmin.f32 %v1142_v61, 6.0  ;;  %v1152_v7 = vmax.f32 %v888_v62, 0.0  ;;  %v1220_v13 = vmin.f32 %v1140_v59, 6.0 }
 0x102   : > { %v1229_v10 = vmin.f32 %v1149_v63, 6.0  ;;  %v1231_v11 = vmin.f32 %v1151_v1, 6.0 }
 0x103   : > { %v1230_v14 = vmin.f32 %v1150_v5, 6.0  ;;  %v818_v15 = vpop.f32.mrb[4].mxu0  ;;  %v1232_v16 = vmin.f32 %v1152_v7, 6.0  ;;  %v891_v17 = vpop.f32.mrb[4].mxu1 }
 0x104   : > { %v1301_v19 = vadd.f32 %v1229_v10, %v1219_v9  ;;  %v819_v20 = vadd.f32 %v818_v15, %v2238_v31  ;;  %v1327_v21 = vadd.f32 %v1231_v11, %v1221_v0  ;;  %v820_v22 = vpop.f32.mrb[5].mxu0  ;;  %v892_v24 = vadd.f32 %v891_v17, %v2240_v32  ;;  %v893_v27 = vpop.f32.mrb[5].mxu1 }
 0x105   : > { %v1314_v2 = vadd.f32 %v1230_v14, %v1220_v13  ;;  %v821_v29 = vadd.f32 %v820_v22, %v2245_v34  ;;  %v1340_v30 = vadd.f32 %v1232_v16, %v1222_v6  ;;  %v822_v33 = vpop.f32.mrb[6].mxu0  ;;  %v894_v36 = vadd.f32 %v893_v27, %v2247_v35  ;;  %v895_v37 = vpop.f32.mrb[6].mxu1 }
 0x106   : > { %v1159_v38 = vmax.f32 %v819_v20, 0.0  ;;  %v823_v26 = vadd.f32 %v822_v33, %v2238_v31  ;;  %v1161_v39 = vmax.f32 %v892_v24, 0.0  ;;  %v824_v41 = vpop.f32.mrb[7].mxu0  ;;  %v896_v42 = vadd.f32 %v895_v37, %v2240_v32  ;;  %v897_v43 = vpop.f32.mrb[7].mxu1 }
 0x107   : > { %v1160_v44 = vmax.f32 %v821_v29, 0.0  ;;  %v825_v46 = vadd.f32 %v824_v41, %v2245_v34  ;;  %v1162_v47 = vmax.f32 %v894_v36, 0.0  ;;  %v898_v48 = vadd.f32 %v897_v43, %v2247_v35 }
 0x108   : > { %v1239_v49 = vmin.f32 %v1159_v38, 6.0  ;;  %v1169_v50 = vmax.f32 %v823_v26, 0.0  ;;  %v1241_v51 = vmin.f32 %v1161_v39, 6.0  ;;  %v1171_v52 = vmax.f32 %v896_v42, 0.0 }
 0x109   : > { %v1240_v53 = vmin.f32 %v1160_v44, 6.0  ;;  %v1170_v54 = vmax.f32 %v825_v46, 0.0  ;;  %v1242_v55 = vmin.f32 %v1162_v47, 6.0  ;;  %v1172_v56 = vmax.f32 %v898_v48, 0.0 }
 0x10a   : > { %v1302_v57 = vadd.f32 %v1301_v19, %v1239_v49  ;;  %v1249_v58 = vmin.f32 %v1169_v50, 6.0  ;;  %v1328_v59 = vadd.f32 %v1327_v21, %v1241_v51  ;;  %v1251_v60 = vmin.f32 %v1171_v52, 6.0 }
 0x10b   : > { %v1315_v61 = vadd.f32 %v1314_v2, %v1240_v53  ;;  %v1250_v62 = vmin.f32 %v1170_v54, 6.0  ;;  %v1341_v63 = vadd.f32 %v1340_v30, %v1242_v55  ;;  %v1252_v0 = vmin.f32 %v1172_v56, 6.0  ;;  %v828_v1 = vpop.f32.mrb[8].mxu0  ;;  %v901_v5 = vpop.f32.mrb[8].mxu1 }
 0x10c   : > { %v1303_v6 = vadd.f32 %v1302_v57, %v1249_v58  ;;  %v1329_v7 = vadd.f32 %v1328_v59, %v1251_v60  ;;  %v829_v9 = vadd.f32 %v828_v1, %v2238_v31  ;;  %v902_v10 = vadd.f32 %v901_v5, %v2240_v32  ;;  %v830_v11 = vpop.f32.mrb[9].mxu0  ;;  %v903_v13 = vpop.f32.mrb[9].mxu1 }
 0x10d   : > { %v1316_v14 = vadd.f32 %v1315_v61, %v1250_v62  ;;  %v1342_v15 = vadd.f32 %v1341_v63, %v1252_v0  ;;  %v831_v16 = vadd.f32 %v830_v11, %v2245_v34  ;;  %v904_v17 = vadd.f32 %v903_v13, %v2247_v35  ;;  %v832_v19 = vpop.f32.mrb[10].mxu0  ;;  %v905_v20 = vpop.f32.mrb[10].mxu1 }
 0x10e   : > { %v1179_v21 = vmax.f32 %v829_v9, 0.0  ;;  %v1181_v22 = vmax.f32 %v902_v10, 0.0  ;;  %v833_v24 = vadd.f32 %v832_v19, %v2238_v31  ;;  %v906_v27 = vadd.f32 %v905_v20, %v2240_v32  ;;  %v834_v2 = vpop.f32.mrb[11].mxu0  ;;  %v907_v29 = vpop.f32.mrb[11].mxu1 }
 0x10f   : > { %v1180_v30 = vmax.f32 %v831_v16, 0.0  ;;  %v1182_v33 = vmax.f32 %v904_v17, 0.0  ;;  %v835_v36 = vadd.f32 %v834_v2, %v2245_v34  ;;  %v908_v37 = vadd.f32 %v907_v29, %v2247_v35 }
 0x110   : > { %v1259_v38 = vmin.f32 %v1179_v21, 6.0  ;;  %v1261_v26 = vmin.f32 %v1181_v22, 6.0  ;;  %v1189_v39 = vmax.f32 %v833_v24, 0.0  ;;  %v1191_v41 = vmax.f32 %v906_v27, 0.0 }
 0x111   : > { %v1260_v42 = vmin.f32 %v1180_v30, 6.0  ;;  %v1262_v43 = vmin.f32 %v1182_v33, 6.0  ;;  %v1190_v44 = vmax.f32 %v835_v36, 0.0  ;;  %v1192_v46 = vmax.f32 %v908_v37, 0.0 }
 0x112   : > { %v1304_v47 = vadd.f32 %v1303_v6, %v1259_v38  ;;  %v1330_v48 = vadd.f32 %v1329_v7, %v1261_v26  ;;  %v1269_v49 = vmin.f32 %v1189_v39, 6.0  ;;  %v1271_v50 = vmin.f32 %v1191_v41, 6.0 }
 0x113   : > { %v1317_v51 = vadd.f32 %v1316_v14, %v1260_v42  ;;  %v1343_v52 = vadd.f32 %v1342_v15, %v1262_v43  ;;  %v1270_v53 = vmin.f32 %v1190_v44, 6.0  ;;  %v1272_v54 = vmin.f32 %v1192_v46, 6.0  ;;  %v838_v55 = vpop.f32.mrb[12].mxu0  ;;  %v911_v56 = vpop.f32.mrb[12].mxu1 }
 0x114   : > { %v1305_v57 = vadd.f32 %v1304_v47, %v1269_v49  ;;  %v1331_v58 = vadd.f32 %v1330_v48, %v1271_v50  ;;  %v839_v59 = vadd.f32 %v838_v55, %v2238_v31  ;;  %v912_v60 = vadd.f32 %v911_v56, %v2240_v32  ;;  %v840_v61 = vpop.f32.mrb[13].mxu0  ;;  %v913_v62 = vpop.f32.mrb[13].mxu1 }
 0x115   : > { %v1318_v63 = vadd.f32 %v1317_v51, %v1270_v53  ;;  %v1344_v0 = vadd.f32 %v1343_v52, %v1272_v54  ;;  %v841_v1 = vadd.f32 %v840_v61, %v2245_v34  ;;  %v914_v5 = vadd.f32 %v913_v62, %v2247_v35  ;;  %v842_v6 = vpop.f32.mrb[14].mxu0  ;;  %v915_v7 = vpop.f32.mrb[14].mxu1 }
 0x116   : > { %v1199_v9 = vmax.f32 %v839_v59, 0.0  ;;  %v1201_v10 = vmax.f32 %v912_v60, 0.0  ;;  %v843_v11 = vadd.f32 %v842_v6, %v2238_v31  ;;  %v916_v13 = vadd.f32 %v915_v7, %v2240_v32  ;;  %v844_v14 = vpop.f32.mrb[15].mxu0  ;;  %v917_v15 = vpop.f32.mrb[15].mxu1 }
 0x117   : > { %v1200_v16 = vmax.f32 %v841_v1, 0.0  ;;  %v1202_v17 = vmax.f32 %v914_v5, 0.0  ;;  %v845_v19 = vadd.f32 %v844_v14, %v2245_v34  ;;  %v918_v20 = vadd.f32 %v917_v15, %v2247_v35 }
 0x118   : > { %v1279_v21 = vmin.f32 %v1199_v9, 6.0  ;;  %v1281_v22 = vmin.f32 %v1201_v10, 6.0  ;;  %v1209_v24 = vmax.f32 %v843_v11, 0.0  ;;  %v1211_v27 = vmax.f32 %v916_v13, 0.0 }
 0x119   : > { %v1280_v2 = vmin.f32 %v1200_v16, 6.0  ;;  %v1282_v29 = vmin.f32 %v1202_v17, 6.0  ;;  %v1210_v30 = vmax.f32 %v845_v19, 0.0  ;;  %v1212_v33 = vmax.f32 %v918_v20, 0.0 }
 0x11a   : > { %v1306_v36 = vadd.f32 %v1305_v57, %v1279_v21  ;;  %v1332_v31 = vadd.f32 %v1331_v58, %v1281_v22  ;;  %v1289_v37 = vmin.f32 %v1209_v24, 6.0  ;;  %v1291_v32 = vmin.f32 %v1211_v27, 6.0 }
 0x11b   : > { %v1319_v38 = vadd.f32 %v1318_v63, %v1280_v2  ;;  %v1345_v26 = vadd.f32 %v1344_v0, %v1282_v29  ;;  %v1290_v39 = vmin.f32 %v1210_v30, 6.0  ;;  %v1292_v41 = vmin.f32 %v1212_v33, 6.0  ;;  %v954_v42 = vpop.f32.mrb[16].mxu0  ;;  %v1027_v34 = vpop.f32.mrb[16].mxu1 }
 0x11c   : > { %v1307_v43 = vadd.f32 %v1306_v36, %v1289_v37  ;;  %v1333_v35 = vadd.f32 %v1332_v31, %v1291_v32  ;;  %v955_v44 = vadd.f32 %v954_v42, %v2249_v40  ;;  %v956_v46 = vpop.f32.mrb[17].mxu0  ;;  %v1028_v47 = vadd.f32 %v1027_v34, %v2263_v3  ;;  %v1029_v48 = vpop.f32.mrb[17].mxu1 }
 0x11d   : > { %v1320_v49 = vadd.f32 %v1319_v38, %v1290_v39  ;;  %v1346_v50 = vadd.f32 %v1345_v26, %v1292_v41  ;;  %v957_v51 = vadd.f32 %v956_v46, %v2253_v45  ;;  %v958_v52 = vpop.f32.mrb[18].mxu0  ;;  %v1030_v53 = vadd.f32 %v1029_v48, %v2270_v8  ;;  %v1031_v54 = vpop.f32.mrb[18].mxu1 }
 0x11e   : > { %v1308_v55 = vrot.slane %v1307_v43, 4  ;;  %v1334_v56 = vrot.slane %v1333_v35, 4  ;;  %v1143_v57 = vmax.f32 %v955_v44, 0.0  ;;  %v959_v58 = vadd.f32 %v958_v52, %v2249_v40  ;;  %v960_v59 = vpop.f32.mrb[19].mxu0  ;;  %v1033_v60 = vpop.f32.mrb[19].mxu1 }
 0x11f   : > { %v1321_v61 = vrot.slane %v1320_v49, 4  ;;  %v1347_v62 = vrot.slane %v1346_v50, 4  ;;  %v1144_v63 = vmax.f32 %v957_v51, 0.0  ;;  %v961_v0 = vadd.f32 %v960_v59, %v2253_v45 }
 0x120   : > { %v1309_v1 = vadd.f32 %v1308_v55, %v1307_v43  ;;  %v1335_v5 = vadd.f32 %v1334_v56, %v1333_v35  ;;  %v1223_v6 = vmin.f32 %v1143_v57, 6.0  ;;  %v1153_v7 = vmax.f32 %v959_v58, 0.0 }
 0x121   : > { %v1322_v9 = vadd.f32 %v1321_v61, %v1320_v49  ;;  %v1348_v10 = vadd.f32 %v1347_v62, %v1346_v50  ;;  %v1224_v11 = vmin.f32 %v1144_v63, 6.0  ;;  %v1154_v13 = vmax.f32 %v961_v0, 0.0 }
 0x122   : > { %v1310_v14 = vrot.slane %v1309_v1, 2  ;;  %v1336_v15 = vrot.slane %v1335_v5, 2  ;;  %v1233_v16 = vmin.f32 %v1153_v7, 6.0  ;;  %v1145_v17 = vmax.f32 %v1028_v47, 0.0 }
 0x123   : > { %v1323_v19 = vrot.slane %v1322_v9, 2  ;;  %v1349_v20 = vrot.slane %v1348_v10, 2  ;;  %v1234_v21 = vmin.f32 %v1154_v13, 6.0  ;;  %v1146_v22 = vmax.f32 %v1030_v53, 0.0  ;;  %v964_v24 = vpop.f32.mrb[20].mxu0  ;;  %v1037_v27 = vpop.f32.mrb[20].mxu1 }
 0x124   : > { %v1311_v2 = vadd.f32 %v1310_v14, %v1309_v1  ;;  %v1337_v29 = vadd.f32 %v1336_v15, %v1335_v5  ;;  %v1353_v30 = vadd.f32 %v1233_v16, %v1223_v6  ;;  %v1225_v33 = vmin.f32 %v1145_v17, 6.0  ;;  %v966_v36 = vpop.f32.mrb[21].mxu0  ;;  %v1039_v31 = vpop.f32.mrb[21].mxu1 }
 0x125   : > { %v1324_v37 = vadd.f32 %v1323_v19, %v1322_v9  ;;  %v1350_v32 = vadd.f32 %v1349_v20, %v1348_v10  ;;  %v1366_v38 = vadd.f32 %v1234_v21, %v1224_v11  ;;  %v1226_v26 = vmin.f32 %v1146_v22, 6.0  ;;  %v968_v39 = vpop.f32.mrb[22].mxu0  ;;  %v1041_v41 = vpop.f32.mrb[22].mxu1 }
 0x126   : > { %v1312_v42 = vrot.slane %v1311_v2, 1  ;;  %v1338_v34 = vrot.slane %v1337_v29, 1  ;;  %v965_v43 = vadd.f32 %v964_v24, %v2249_v40  ;;  %v1032_v35 = vadd.f32 %v1031_v54, %v2263_v3  ;;  %v970_v44 = vpop.f32.mrb[23].mxu0  ;;  %v1043_v46 = vpop.f32.mrb[23].mxu1 }
 0x127   : > { %v1325_v47 = vrot.slane %v1324_v37, 1  ;;  %v1351_v48 = vrot.slane %v1350_v32, 1  ;;  %v967_v49 = vadd.f32 %v966_v36, %v2253_v45  ;;  %v1034_v50 = vadd.f32 %v1033_v60, %v2270_v8 }
 0x128   : > { %v1313_v51 = vadd.f32 %v1312_v42, %v1311_v2  ;;  %v1339_v52 = vadd.f32 %v1338_v34, %v1337_v29  ;;  %v1163_v53 = vmax.f32 %v965_v43, 0.0  ;;  %v1155_v55 = vmax.f32 %v1032_v35, 0.0 }
 0x129   : > { %v1326_v56 = vadd.f32 %v1325_v47, %v1324_v37  ;;  %v1352_v57 = vadd.f32 %v1351_v48, %v1350_v32  ;;  %v1164_v58 = vmax.f32 %v967_v49, 0.0  ;;  %v1156_v59 = vmax.f32 %v1034_v50, 0.0 }
 0x12a   : > { %v1243_v61 = vmin.f32 %v1163_v53, 6.0  ;;  %v1235_v62 = vmin.f32 %v1155_v55, 6.0  ;;  %v969_v54 = vadd.f32 %v968_v39, %v2249_v40  ;;  %v1038_v63 = vadd.f32 %v1037_v27, %v2263_v3 }
 0x12b   : > { %v1441_v0 = vcombine.low %v1313_v51, %v1326_v56  ;;  %v1442_v1 = vcombine.low %v1339_v52, %v1352_v57  ;;  %v1244_v5 = vmin.f32 %v1164_v58, 6.0  ;;  %v1236_v6 = vmin.f32 %v1156_v59, 6.0  ;;  %v974_v7 = vpop.f32.mrb[24].mxu0  ;;  %v1047_v60 = vpop.f32.mrb[24].mxu1 }
 0x12c   : > { %v1354_v9 = vadd.f32 %v1353_v30, %v1243_v61  ;;  %v1379_v10 = vadd.f32 %v1235_v62, %v1225_v33  ;;  %v1173_v11 = vmax.f32 %v969_v54, 0.0  ;;  %v1165_v13 = vmax.f32 %v1038_v63, 0.0  ;;  %v976_v14 = vpop.f32.mrb[25].mxu0  ;;  %v1049_v15 = vpop.f32.mrb[25].mxu1 }
 0x12d   : > { %v2315_v16 = vrot.slane %v1441_v0, %v2273_v12  ;;  %v2318_v17 = vrot.slane %v1442_v1, %v2273_v12  ;;  %v1367_v19 = vadd.f32 %v1366_v38, %v1244_v5  ;;  %v1392_v20 = vadd.f32 %v1236_v6, %v1226_v26  ;;  %v978_v21 = vpop.f32.mrb[26].mxu0  ;;  %v1051_v22 = vpop.f32.mrb[26].mxu1 }
 0x12e   : > { %v1253_v24 = vmin.f32 %v1173_v11, 6.0  ;;  %v1245_v27 = vmin.f32 %v1165_v13, 6.0  ;;  %v971_v2 = vadd.f32 %v970_v44, %v2253_v45  ;;  %v1040_v29 = vadd.f32 %v1039_v31, %v2270_v8  ;;  %v980_v30 = vpop.f32.mrb[27].mxu0  ;;  %v1053_v33 = vpop.f32.mrb[27].mxu1 }
 0x12f   : > { %v1473_v36 = vcombine.low %v2315_v16, %v2318_v17  ;;  %v1042_v37 = vadd.f32 %v1041_v41, %v2263_v3  ;;  %v1044_v32 = vadd.f32 %v1043_v46, %v2270_v8  ;;  %v975_v38 = vadd.f32 %v974_v7, %v2249_v40 }
 0x130   : > { %v1355_v26 = vadd.f32 %v1354_v9, %v1253_v24  ;;  %v1380_v39 = vadd.f32 %v1379_v10, %v1245_v27  ;;  %v1174_v42 = vmax.f32 %v971_v2, 0.0  ;;  %v1166_v34 = vmax.f32 %v1040_v29, 0.0 }
 0x131   : > { %v1175_v43 = vmax.f32 %v1042_v37, 0.0  ;;  %v1176_v35 = vmax.f32 %v1044_v32, 0.0  ;;  %v1183_v44 = vmax.f32 %v975_v38, 0.0  ;;  %v2330_v31 = vrot.slane %v2268_v4, %v306_v28 }
 0x132   : > { %v1254_v47 = vmin.f32 %v1174_v42, 6.0  ;;  %v1246_v48 = vmin.f32 %v1166_v34, 6.0  ;;  %v1048_v41 = vadd.f32 %v1047_v60, %v2263_v3  ;;  %v977_v46 = vadd.f32 %v976_v14, %v2253_v45 }
 0x133   : > { %v1255_v49 = vmin.f32 %v1175_v43, 6.0  ;;  %v1256_v50 = vmin.f32 %v1176_v35, 6.0  ;;  %v1263_v51 = vmin.f32 %v1183_v44, 6.0  ;;  %v1050_v52 = vadd.f32 %v1049_v15, %v2270_v8  ;;  %v984_v53 = vpop.f32.mrb[28].mxu0  ;;  %v1057_v55 = vpop.f32.mrb[28].mxu1 }
 0x134   : > { %v1368_v56 = vadd.f32 %v1367_v19, %v1254_v47  ;;  %v1393_v57 = vadd.f32 %v1392_v20, %v1246_v48  ;;  %v1185_v58 = vmax.f32 %v1048_v41, 0.0  ;;  %v1184_v25 = vmax.f32 %v977_v46, 0.0  ;;  %v986_v59 = vpop.f32.mrb[29].mxu0  ;;  %v1059_v28 = vpop.f32.mrb[29].mxu1 }
 0x135   : > { %v1381_v4 = vadd.f32 %v1380_v39, %v1255_v49  ;;  %v1356_v61 = vadd.f32 %v1355_v26, %v1263_v51  ;;  %v1186_v62 = vmax.f32 %v1050_v52, 0.0  ;;  %v979_v54 = vadd.f32 %v978_v21, %v2249_v40  ;;  %v988_v63 = vpop.f32.mrb[30].mxu0  ;;  %v1061_v0 = vpop.f32.mrb[30].mxu1 }
 0x136   : > { %v1394_v1 = vadd.f32 %v1393_v57, %v1256_v50  ;;  %v1265_v5 = vmin.f32 %v1185_v58, 6.0  ;;  %v1264_v6 = vmin.f32 %v1184_v25, 6.0  ;;  %v1052_v7 = vadd.f32 %v1051_v22, %v2263_v3  ;;  %v990_v60 = vpop.f32.mrb[31].mxu0  ;;  %v1063_v9 = vpop.f32.mrb[31].mxu1 }
 0x137   : > { %v1266_v10 = vmin.f32 %v1186_v62, 6.0  ;;  %v1193_v11 = vmax.f32 %v979_v54, 0.0  ;;  %v981_v13 = vadd.f32 %v980_v30, %v2253_v45  ;;  %v1054_v14 = vadd.f32 %v1053_v33, %v2270_v8 }
 0x138   : > { %v1382_v15 = vadd.f32 %v1381_v4, %v1265_v5  ;;  %v1369_v19 = vadd.f32 %v1368_v56, %v1264_v6  ;;  %v1195_v20 = vmax.f32 %v1052_v7, 0.0  ;;  %v985_v21 = vadd.f32 %v984_v53, %v2249_v40 }
 0x139   : > { %v1395_v24 = vadd.f32 %v1394_v1, %v1266_v10  ;;  %v1273_v27 = vmin.f32 %v1193_v11, 6.0  ;;  %v1194_v2 = vmax.f32 %v981_v13, 0.0  ;;  %v1196_v29 = vmax.f32 %v1054_v14, 0.0 }
 0x13a   : > { %v1275_v37 = vmin.f32 %v1195_v20, 6.0  ;;  %v1203_v32 = vmax.f32 %v985_v21, 0.0  ;;  %v1058_v22 = vadd.f32 %v1057_v55, %v2263_v3  ;;  %v987_v38 = vadd.f32 %v986_v59, %v2253_v45 }
 0x13b   : > { %v1357_v26 = vadd.f32 %v1356_v61, %v1273_v27  ;;  %v1274_v39 = vmin.f32 %v1194_v2, 6.0  ;;  %v1276_v30 = vmin.f32 %v1196_v29, 6.0  ;;  %v1060_v33 = vadd.f32 %v1059_v28, %v2270_v8  ;;  %v1100_v42 = vpop.f32.mrb[32].mxu0 }
 0x13c   : > { %v1383_v34 = vadd.f32 %v1382_v15, %v1275_v37  ;;  %v1283_v43 = vmin.f32 %v1203_v32, 6.0  ;;  %v1205_v35 = vmax.f32 %v1058_v22, 0.0  ;;  %v1204_v44 = vmax.f32 %v987_v38, 0.0  ;;  %v1102_v47 = vpop.f32.mrb[33].mxu0 }
 0x13d   : > { %v1370_v48 = vadd.f32 %v1369_v19, %v1274_v39  ;;  %v1396_v41 = vadd.f32 %v1395_v24, %v1276_v30  ;;  %v1206_v46 = vmax.f32 %v1060_v33, 0.0  ;;  %v989_v49 = vadd.f32 %v988_v63, %v2249_v40  ;;  %v1104_v50 = vpop.f32.mrb[34].mxu0  ;;  %v1120_v51 = vpop.f32.mrb[32].mxu1 }
 0x13e   : > { %v1358_v52 = vadd.f32 %v1357_v26, %v1283_v43  ;;  %v1285_v53 = vmin.f32 %v1205_v35, 6.0  ;;  %v1284_v55 = vmin.f32 %v1204_v44, 6.0  ;;  %v1062_v56 = vadd.f32 %v1061_v0, %v2263_v3  ;;  %v1106_v57 = vpop.f32.mrb[35].mxu0  ;;  %v1122_v58 = vpop.f32.mrb[33].mxu1 }
 0x13f   : > { %v1286_v25 = vmin.f32 %v1206_v46, 6.0  ;;  %v1213_v59 = vmax.f32 %v989_v49, 0.0  ;;  %v991_v28 = vadd.f32 %v990_v60, %v2253_v45  ;;  %v1064_v4 = vadd.f32 %v1063_v9, %v2270_v8  ;;  %v1124_v61 = vpop.f32.mrb[34].mxu1 }
 0x140   : > { %v1384_v62 = vadd.f32 %v1383_v34, %v1285_v53  ;;  %v1371_v54 = vadd.f32 %v1370_v48, %v1284_v55  ;;  %v1215_v1 = vmax.f32 %v1062_v56, 0.0  ;;  %v1101_v40 = vadd.f32 %v1100_v42, %v2276_v18  ;;  %v1126_v63 = vpop.f32.mrb[35].mxu1 }
 0x141   : > { %v1397_v5 = vadd.f32 %v1396_v41, %v1286_v25  ;;  %v1293_v6 = vmin.f32 %v1213_v59, 6.0  ;;  %v1214_v7 = vmax.f32 %v991_v28, 0.0  ;;  %v1216_v10 = vmax.f32 %v1064_v4, 0.0 }
 0x142   : > { %v1295_v3 = vmin.f32 %v1215_v1, 6.0  ;;  %v1147_v0 = vmax.f32 %v1101_v40, 0.0  ;;  %v1103_v11 = vadd.f32 %v1102_v47, %v2330_v31  ;;  %v1105_v13 = vadd.f32 %v1104_v50, %v2276_v18 }
 0x143   : > { %v1359_v45 = vadd.f32 %v1358_v52, %v1293_v6  ;;  %v1294_v60 = vmin.f32 %v1214_v7, 6.0  ;;  %v1296_v8 = vmin.f32 %v1216_v10, 6.0  ;;  %v1107_v9 = vadd.f32 %v1106_v57, %v2330_v31  ;;  %v1110_v14 = vpop.f32.mrb[36].mxu0 }
 0x144   : > { %v1385_v15 = vadd.f32 %v1384_v62, %v1295_v3  ;;  %v1148_v19 = vmax.f32 %v1103_v11, 0.0  ;;  %v1157_v20 = vmax.f32 %v1105_v13, 0.0  ;;  %v1112_v21 = vpop.f32.mrb[37].mxu0  ;;  %v1227_v38 = vmin.f32 %v1147_v0, 6.0 }
 0x145   : > { %v1360_v24 = vrot.slane %v1359_v45, 4  ;;  %v1372_v27 = vadd.f32 %v1371_v54, %v1294_v60  ;;  %v1398_v2 = vadd.f32 %v1397_v5, %v1296_v8  ;;  %v1158_v29 = vmax.f32 %v1107_v9, 0.0  ;;  %v1114_v37 = vpop.f32.mrb[38].mxu0  ;;  %v1130_v32 = vpop.f32.mrb[36].mxu1 }
 0x146   : > { %v1386_v22 = vrot.slane %v1385_v15, 4  ;;  %v1228_v26 = vmin.f32 %v1148_v19, 6.0  ;;  %v1237_v39 = vmin.f32 %v1157_v20, 6.0  ;;  %v1116_v30 = vpop.f32.mrb[39].mxu0  ;;  %v1132_v33 = vpop.f32.mrb[37].mxu1  ;;  %v1121_v41 = vadd.f32 %v1120_v51, %v2276_v18 }
 0x147   : > { %v1361_v42 = vadd.f32 %v1360_v24, %v1359_v45  ;;  %v1373_v34 = vrot.slane %v1372_v27, 4  ;;  %v1399_v43 = vrot.slane %v1398_v2, 4  ;;  %v1238_v35 = vmin.f32 %v1158_v29, 6.0  ;;  %v1134_v44 = vpop.f32.mrb[38].mxu1 }
 0x148   : > { %v1387_v47 = vadd.f32 %v1386_v22, %v1385_v15  ;;  %v1405_v48 = vadd.f32 %v1237_v39, %v1227_v38  ;;  %v1136_v46 = vpop.f32.mrb[39].mxu1  ;;  %v1111_v56 = vadd.f32 %v1110_v14, %v2276_v18  ;;  %v1123_v28 = vadd.f32 %v1122_v58, %v2330_v31 }
 0x149   : > { %v1362_v49 = vrot.slane %v1361_v42, 2  ;;  %v1374_v50 = vadd.f32 %v1373_v34, %v1372_v27  ;;  %v1400_v52 = vadd.f32 %v1399_v43, %v1398_v2  ;;  %v1418_v53 = vadd.f32 %v1238_v35, %v1228_v26 }
 0x14a   : > { %v1388_v55 = vrot.slane %v1387_v47, 2  ;;  %v1167_v62 = vmax.f32 %v1111_v56, 0.0  ;;  %v1125_v54 = vadd.f32 %v1124_v61, %v2276_v18  ;;  %v1113_v1 = vadd.f32 %v1112_v21, %v2330_v31 }
 0x14b   : > { %v1363_v57 = vadd.f32 %v1362_v49, %v1361_v42  ;;  %v1375_v25 = vrot.slane %v1374_v50, 2  ;;  %v1401_v59 = vrot.slane %v1400_v52, 2  ;;  %v1187_v6 = vmax.f32 %v1121_v41, 0.0 }
 0x14c   : > { %v1389_v4 = vadd.f32 %v1388_v55, %v1387_v47  ;;  %v1247_v10 = vmin.f32 %v1167_v62, 6.0  ;;  %v1168_v3 = vmax.f32 %v1113_v1, 0.0  ;;  %v1127_v0 = vadd.f32 %v1126_v63, %v2330_v31 }
 0x14d   : > { %v1364_v51 = vrot.slane %v1363_v57, 1  ;;  %v1376_v40 = vadd.f32 %v1375_v25, %v1374_v50  ;;  %v1402_v5 = vadd.f32 %v1401_v59, %v1400_v52  ;;  %v1188_v60 = vmax.f32 %v1123_v28, 0.0 }
 0x14e   : > { %v1390_v7 = vrot.slane %v1389_v4, 1  ;;  %v1406_v8 = vadd.f32 %v1405_v48, %v1247_v10  ;;  %v1197_v9 = vmax.f32 %v1125_v54, 0.0  ;;  %v1248_v14 = vmin.f32 %v1168_v3, 6.0 }
 0x14f   : > { %v1365_v11 = vadd.f32 %v1364_v51, %v1363_v57  ;;  %v1377_v13 = vrot.slane %v1376_v40, 1  ;;  %v1403_v45 = vrot.slane %v1402_v5, 1  ;;  %v1115_v19 = vadd.f32 %v1114_v37, %v2276_v18 }
 0x150   : > { %v1391_v58 = vadd.f32 %v1390_v7, %v1389_v4  ;;  %v1117_v20 = vadd.f32 %v1116_v30, %v2330_v31  ;;  %v1419_v21 = vadd.f32 %v1418_v53, %v1248_v14  ;;  %v1198_v24 = vmax.f32 %v1127_v0, 0.0 }
 0x151   : > { %v1378_v61 = vadd.f32 %v1377_v13, %v1376_v40  ;;  %v1404_v15 = vadd.f32 %v1403_v45, %v1402_v5  ;;  %v1131_v27 = vadd.f32 %v1130_v32, %v2276_v18  ;;  %v1133_v63 = vadd.f32 %v1132_v33, %v2330_v31 }
 0x152   : > { %v1177_v22 = vmax.f32 %v1115_v19, 0.0  ;;  %v1178_v38 = vmax.f32 %v1117_v20, 0.0  ;;  %v1135_v42 = vadd.f32 %v1134_v44, %v2276_v18  ;;  %v1137_v34 = vadd.f32 %v1136_v46, %v2330_v31 }
 0x153   : > { %v1443_v2 = vcombine.low %v1365_v11, %v1378_v61  ;;  %v1444_v29 = vcombine.low %v1391_v58, %v1404_v15  ;;  %v1207_v26 = vmax.f32 %v1131_v27, 0.0  ;;  %v1208_v39 = vmax.f32 %v1133_v63, 0.0 }
 0x154   : > { %v1257_v43 = vmin.f32 %v1177_v22, 6.0  ;;  %v1258_v35 = vmin.f32 %v1178_v38, 6.0  ;;  %v1481_v32 = vrot.slane %v1473_v36, %v2273_v12  ;;  %v1267_v33 = vmin.f32 %v1187_v6, 6.0 }
 0x155   : > { %v1465_v37 = vrot.slane %v1443_v2, %v2273_v12  ;;  %v1472_v30 = vrot.slane %v1444_v29, %v2273_v12  ;;  %v1268_v47 = vmin.f32 %v1188_v60, 6.0  ;;  %v1277_v41 = vmin.f32 %v1197_v9, 6.0 }
 0x156   : > { %v1407_v49 = vadd.f32 %v1406_v8, %v1257_v43  ;;  %v1420_v18 = vadd.f32 %v1419_v21, %v1258_v35  ;;  %v1278_v44 = vmin.f32 %v1198_v24, 6.0  ;;  %v1287_v31 = vmin.f32 %v1207_v26, 6.0  ;;  %v1300_v8 = vld [vmem:[#allocation2 + $0x8] sm:$0x3] }
 0x157   : > { %v1474_v48 = vcombine.low %v1465_v37, %v1472_v30  ;;  %v1288_v46 = vmin.f32 %v1208_v39, 6.0  ;;  %v1217_v50 = vmax.f32 %v1135_v42, 0.0  ;;  %v1218_v56 = vmax.f32 %v1137_v34, 0.0 }
 0x158   : > { %v1408_v53 = vadd.f32 %v1407_v49, %v1267_v33  ;;  %v1421_v55 = vadd.f32 %v1420_v18, %v1268_v47 }
 0x159   : > { %v1488_v52 = vrot.slane %v1474_v48, %v2273_v12  ;;  %v1297_v36 = vmin.f32 %v1217_v50, 6.0  ;;  %v1298_v28 = vmin.f32 %v1218_v56, 6.0 }
 0x15a   : > { %v1409_v16 = vadd.f32 %v1408_v53, %v1277_v41  ;;  %v1422_v17 = vadd.f32 %v1421_v55, %v1278_v44 }
 0x15b   : > { %v1489_v57 = vcombine.low %v1481_v32, %v1488_v52 }
 0x15c   : > { %v1410_v25 = vadd.f32 %v1409_v16, %v1287_v31  ;;  %v1423_v59 = vadd.f32 %v1422_v17, %v1288_v46 }
 0x15d   : > { %v1520_v54 = vmul.f32 0.015625, %v1489_v57 }
 0x15e   : > { %v1411_v4 = vadd.f32 %v1410_v25, %v1297_v36  ;;  %v1424_v62 = vadd.f32 %v1423_v59, %v1298_v28 }
 0x15f   : > { %1522 = vst [vmem:[%s196_s29] sm:$0xff] %v1520_v54 }
 0x160   : > { %v1412_v1 = vrot.slane %v1411_v4, 4  ;;  %v1425_v51 = vrot.slane %v1424_v62, 4 }
 0x162   : > { %v1413_v40 = vadd.f32 %v1412_v1, %v1411_v4  ;;  %v1426_v5 = vadd.f32 %v1425_v51, %v1424_v62 }
 0x164   : > { %v1414_v6 = vrot.slane %v1413_v40, 2  ;;  %v1427_v7 = vrot.slane %v1426_v5, 2 }
 0x166   : > { %v1415_v10 = vadd.f32 %v1414_v6, %v1413_v40  ;;  %v1428_v3 = vadd.f32 %v1427_v7, %v1426_v5 }
 0x168   : > { %v1416_v0 = vrot.slane %v1415_v10, 1  ;;  %v1429_v11 = vrot.slane %v1428_v3, 1 }
 0x16a   : > { %v1417_v13 = vadd.f32 %v1416_v0, %v1415_v10  ;;  %v1430_v45 = vadd.f32 %v1429_v11, %v1428_v3 }
 0x16c   : > { %v1490_v60 = vcombine.low %v1417_v13, %v1430_v45 }
 0x16e   : > { %v1497_v58 = vrot.slane %v1490_v60, %v2273_v12 }
 0x170   : > { %v1504_v9 = vrot.slane %v1497_v58, %v2273_v12 }
 0x172   : > { %v1508_v14 = vadd.f32 %v1504_v9, %v1300_v8 }
 0x174   : > { %1514 = vst.msk [vmem:[#allocation2 + $0x8] sm:$0x3] %vm2222_vm0, %v1508_v14 }
 0x17b   : > { %v1519_v61 = vld [vmem:[#allocation2 + $0x8] sm:$0x3] }
 0x17c   : > { %v1521_v15 = vmul.f32 0.015625, %v1519_v61 }
 0x17e   : > { %1523 = vst.msk [vmem:[%s196_s29 + $0x8] sm:$0x3] %vm2222_vm0, %v1521_v15 }
 0x17f PF: > { %s13_s14 = sadd.s32 1, %s1875_s14   ;;  %s2395_s12 = smov %s1871_s13 }
 0x180   : > { %p10_p5 = scmp.ge.s32.totalorder %s13_s14, 4   ;;  %s2396_s13 = smov %s2398_s15 }
 0x182   :  { %12 = sbr.rel (!%p10_p5) target bundleno = 2 (0x2), region = 70 }

</bundles_post_ra>
